<compile_context>
chip_gen: v5e
topology: v5e:2x2
jax: 0.10.0
libtpu: 0.0.40
codegen_flags: <defaults>
</compile_context>

<pallas_src>
import functools

import jax
import jax.numpy as jnp
from jax import lax
from jax.experimental import pallas as pl
from jax.experimental.pallas import tpu as pltpu


# ----------------------------------------------------------------------------
# Kernel A: single-invocation LSTM recurrence -> batch-major hidden slab.
# ----------------------------------------------------------------------------
def _lstm_kernel(x_ref, wih_ref, whh_ref, b_ref, hs_ref, *, T, B):
    """
    x_ref  : (T*B, Ep) time-major flattened embeddings (mm dtype, Ep lane-aligned)
    wih_ref: (Ep, 4H)  input->gates weights (mm dtype)
    whh_ref: (H, 4H)   hidden->gates weights (mm dtype)
    b_ref  : (1, 4H)   b_ih + b_hh (f32)
    hs_ref : (B, T, H) hidden states, BATCH-major (mm dtype) -> free reshape
             to (B*T, H) in the wrapper; no transpose is ever materialized.
    """
    H = whh_ref.shape[0]
    mm_dtype = whh_ref.dtype

    w_hh = whh_ref[...]

    # Non-recurrent input projection, hoisted out of the recurrence:
    # one (T*B, Ep) @ (Ep, 4H) MXU pass; bias folded in once, not per step.
    gates_x = (jnp.dot(x_ref[...], wih_ref[...],
                       preferred_element_type=jnp.float32)
               + b_ref[...])                                # (T*B, 4H) f32

    h = jnp.zeros((B, H), jnp.float32)
    c = jnp.zeros((B, H), jnp.float32)
    h_mm = jnp.zeros((B, H), mm_dtype)

    # T is a small static constant -> fully unrolled.  Only h @ W_hh and the
    # gate nonlinearities sit on the serial path.  Gate order matches
    # PyTorch nn.LSTM: [i, f, g, o].
    # TODO(synk): for larger T / H, keep W_hh resident in MXU weight registers
    # across the loop via pltpu.matmul_push_rhs / matmul_acc_lhs / matmul_pop.
    for t in range(T):
        g = gates_x[t * B:(t + 1) * B, :] + jnp.dot(
            h_mm, w_hh, preferred_element_type=jnp.float32)  # (B, 4H) f32
        i = jax.nn.sigmoid(g[:, 0 * H:1 * H])
        f = jax.nn.sigmoid(g[:, 1 * H:2 * H])
        gg = jnp.tanh(g[:, 2 * H:3 * H])
        o = jax.nn.sigmoid(g[:, 3 * H:4 * H])
        # Gate / state math stays f32 (v5e has no bf16 VPU/EUP; also keeps the
        # state recurrence numerics close to the PyTorch reference).
        c = f * c + i * gg
        h = o * jnp.tanh(c)
        h_mm = h.astype(mm_dtype)
        # Direct batch-major store into the output slab (no list + concat).
        hs_ref[:, t, :] = h_mm


# ----------------------------------------------------------------------------
# Kernel B: FC projection, tiled (and megacore-parallel) over the vocab dim.
# ----------------------------------------------------------------------------
def _fc_kernel(hs_ref, wfc_ref, bfc_ref, out_ref):
    """
    hs_ref : (B*T, H)   batch-major hidden slab (mm dtype), same block every step
    wfc_ref: (H, tv)    FC weight V-tile (mm dtype)
    bfc_ref: (1, tv)    FC bias V-tile (f32)
    out_ref: (B*T, tv)  logits V-tile (f32), lane-dense store
    """
    out_ref[...] = (jnp.dot(hs_ref[...], wfc_ref[...],
                            preferred_element_type=jnp.float32)
                    + bfc_ref[...]).astype(out_ref.dtype)


# ----------------------------------------------------------------------------
# Parameter prep (one-time): pad E to a lane multiple, pre-cast matmul inputs.
# ----------------------------------------------------------------------------
def prepare_params(emb_table, w_ih, w_hh, b_gates, w_fc, b_fc,
                   *, use_bf16_matmul=True):
    E = emb_table.shape[1]
    Ep = ((E + 127) // 128) * 128
    if Ep != E:
        # Zero-pad embedding columns and W_ih rows: lane-dense input
        # projection with zero numeric change.
        emb_table = jnp.pad(emb_table, ((0, 0), (0, Ep - E)))
        w_ih = jnp.pad(w_ih, ((0, Ep - E), (0, 0)))
    mm_dtype = jnp.bfloat16 if use_bf16_matmul else jnp.float32
    return dict(
        emb_table=emb_table.astype(mm_dtype),
        w_ih=w_ih.astype(mm_dtype),
        w_hh=w_hh.astype(mm_dtype),
        b_gates=b_gates.astype(jnp.float32),
        w_fc=w_fc.astype(mm_dtype),
        b_fc=b_fc.astype(jnp.float32),
    )


# ----------------------------------------------------------------------------
# Forward pass (equivalent to Seq2SQLModel.forward).
# ----------------------------------------------------------------------------
def seq2sql_forward(tokens, params, *, fc_tile_v=None):
    """tokens: (B, T) int32.  Returns logits (B, T, V) like the PyTorch module."""
    B, T = tokens.shape
    emb_table = params["emb_table"]
    w_ih, w_hh, b_gates = params["w_ih"], params["w_hh"], params["b_gates"]
    w_fc, b_fc = params["w_fc"], params["b_fc"]
    Ep = emb_table.shape[1]
    H = w_hh.shape[0]
    V = w_fc.shape[1]
    mm_dtype = w_hh.dtype

    # Embedding lookup (data-dependent gather) -- plain-JAX glue.  Gathered
    # directly in time-major order from the pre-padded / pre-cast table, so
    # the kernel input arrives lane-aligned and already in matmul dtype.
    # TODO(synk): could be fused into the kernel via PrefetchScalarGridSpec +
    # a pl.Element row gather once B*T*E is large enough to matter.
    x_flat = jnp.take(emb_table, tokens.T, axis=0).reshape(T * B, Ep)

    # ---- Kernel A: recurrence -> batch-major hidden slab (B, T, H) ----
    hs = pl.pallas_call(
        functools.partial(_lstm_kernel, T=T, B=B),
        out_shape=jax.ShapeDtypeStruct((B, T, H), mm_dtype),
        in_specs=[pl.BlockSpec(memory_space=pltpu.MemorySpace.VMEM)] * 4,
        out_specs=pl.BlockSpec(memory_space=pltpu.MemorySpace.VMEM),
    )(x_flat, w_ih, w_hh, b_gates)

    hs_flat = hs.reshape(B * T, H)          # contiguous -> free reshape

    # ---- Kernel B: FC projection, tiled over V, lane-dense output ----
    if fc_tile_v is None:
        fc_tile_v = V
        for cand in (2048, 1024, 512, 256, 128):
            if V % cand == 0:
                fc_tile_v = cand
                break
    assert V % fc_tile_v == 0 and fc_tile_v % 128 == 0, (V, fc_tile_v)
    grid_v = V // fc_tile_v

    out_flat = pl.pallas_call(
        _fc_kernel,
        out_shape=jax.ShapeDtypeStruct((B * T, V), jnp.float32),
        grid=(grid_v,),
        in_specs=[
            pl.BlockSpec((B * T, H), lambda j: (0, 0)),        # resident slab
            pl.BlockSpec((H, fc_tile_v), lambda j: (0, j)),    # W_fc V-tile
            pl.BlockSpec((1, fc_tile_v), lambda j: (0, j)),    # b_fc V-tile
        ],
        out_specs=pl.BlockSpec((B * T, fc_tile_v), lambda j: (0, j)),
        compiler_params=pltpu.CompilerParams(
            # Independent V tiles: shards across both TensorCores on v7x.
            dimension_semantics=("parallel",)),
    )(hs_flat, w_fc, b_fc)

    # Already batch-major: just a free reshape, no transpose / extra HBM pass.
    return out_flat.reshape(B, T, V)


# ----------------------------------------------------------------------------
# Pure-JAX f32 reference of the PyTorch forward (for correctness check).
# ----------------------------------------------------------------------------
def seq2sql_reference(tokens, emb_table, w_ih, w_hh, b_gates, w_fc, b_fc):
    H = w_hh.shape[0]
    B = tokens.shape[0]
    x_tm = jnp.take(emb_table, tokens.T, axis=0)            # (T, B, E)

    def step(carry, x_t):
        h, c = carry
        gates = x_t @ w_ih + h @ w_hh + b_gates[0]
        i = jax.nn.sigmoid(gates[:, 0 * H:1 * H])
        f = jax.nn.sigmoid(gates[:, 1 * H:2 * H])
        g = jnp.tanh(gates[:, 2 * H:3 * H])
        o = jax.nn.sigmoid(gates[:, 3 * H:4 * H])
        c = f * c + i * g
        h = o * jnp.tanh(c)
        return (h, c), h

    h0 = jnp.zeros((B, H), jnp.float32)
    c0 = jnp.zeros((B, H), jnp.float32)
    _, hs = lax.scan(step, (h0, c0), x_tm)                  # (T, B, H)
    logits = hs @ w_fc + b_fc[0]                            # (T, B, V)
    return jnp.transpose(logits, (1, 0, 2))                 # (B, T, V)


if __name__ == "__main__":
    # Small shapes consistent with the module's forward:
    #   batch=2, seq=8, embedding_dim=100 (as in the spec, padded to 128 in
    #   the kernel path), hidden_dim=128, vocab_size=512 (small stand-in for
    #   the GloVe vocab; multiple of 128 so the FC output tiles are
    #   lane-dense and the V grid has >1 step).
    B, T, E, H, V = 2, 8, 100, 128, 512

    key = jax.random.PRNGKey(0)
    k_tok, k_emb, k_wih, k_whh, k_bih, k_bhh, k_wfc, k_bfc = jax.random.split(key, 8)

    tokens = jax.random.randint(k_tok, (B, T), 0, V, dtype=jnp.int32)

    # Deterministic parameter init (uniform, PyTorch-like scale).
    emb_table = jax.random.normal(k_emb, (V, E), jnp.float32)
    s = 1.0 / jnp.sqrt(H)
    w_ih = jax.random.uniform(k_wih, (E, 4 * H), jnp.float32, -s, s)
    w_hh = jax.random.uniform(k_whh, (H, 4 * H), jnp.float32, -s, s)
    b_ih = jax.random.uniform(k_bih, (1, 4 * H), jnp.float32, -s, s)
    b_hh = jax.random.uniform(k_bhh, (1, 4 * H), jnp.float32, -s, s)
    b_gates = b_ih + b_hh
    w_fc = jax.random.uniform(k_wfc, (H, V), jnp.float32, -s, s)
    b_fc = jax.random.uniform(k_bfc, (1, V), jnp.float32, -s, s)

    ref = seq2sql_reference(tokens, emb_table, w_ih, w_hh, b_gates, w_fc, b_fc)

    # f32 path: must match the PyTorch-equivalent reference tightly.
    params_f32 = prepare_params(emb_table, w_ih, w_hh, b_gates, w_fc, b_fc,
                                use_bf16_matmul=False)
    out = seq2sql_forward(tokens, params_f32, fc_tile_v=256)   # V grid of 2
    out = jax.block_until_ready(out)
    assert out.shape == (B, T, V), out.shape
    assert jnp.allclose(out, ref, atol=1e-4, rtol=1e-4), "f32 mismatch vs reference"

    # bf16-MXU path (default perf config): bf16 matmul inputs (pre-cast once),
    # f32 accumulation and f32 gate/state math -> small deviation from f32 ref.
    params_bf16 = prepare_params(emb_table, w_ih, w_hh, b_gates, w_fc, b_fc,
                                 use_bf16_matmul=True)
    out_bf16 = seq2sql_forward(tokens, params_bf16, fc_tile_v=256)
    out_bf16 = jax.block_until_ready(out_bf16)
    assert out_bf16.shape == (B, T, V), out_bf16.shape
    assert jnp.allclose(out_bf16, ref, atol=1e-1, rtol=1e-1), "bf16 mismatch vs reference"

    print("KERNEL_OK")
</pallas_src>

<mosaic_0001>
module attributes {stable_mosaic.version = 11 : i64} {
  func.func @_lstm_kernel(%arg0: memref<16x128xf32, #tpu.memory_space<vmem>>, %arg1: memref<128x512xf32, #tpu.memory_space<vmem>>, %arg2: memref<128x512xf32, #tpu.memory_space<vmem>>, %arg3: memref<1x512xf32, #tpu.memory_space<vmem>>, %arg4: memref<2x8x128xf32, #tpu.memory_space<vmem>>) attributes {dimension_semantics = [], scalar_prefetch = 0 : i64, scratch_operands = 0 : i64, tpu.core_type = #tpu.core_type<tc>} {
    %c0 = arith.constant 0 : index
    %c0_0 = arith.constant 0 : index
    %0 = vector.load %arg2[%c0, %c0_0] : memref<128x512xf32, #tpu.memory_space<vmem>>, vector<128x512xf32>
    %c0_1 = arith.constant 0 : index
    %c0_2 = arith.constant 0 : index
    %1 = vector.load %arg0[%c0_1, %c0_2] : memref<16x128xf32, #tpu.memory_space<vmem>>, vector<16x128xf32>
    %c0_3 = arith.constant 0 : index
    %c0_4 = arith.constant 0 : index
    %2 = vector.load %arg1[%c0_3, %c0_4] : memref<128x512xf32, #tpu.memory_space<vmem>>, vector<128x512xf32>
    %cst = arith.constant dense<0.000000e+00> : vector<16x512xf32>
    %3 = tpu.matmul %1, %2, %cst {dimension_numbers = #tpu.dot_dimension_numbers<[1], [0], [0], [1], [0, 0, 1, 1], [], []>} : vector<16x128xf32>, vector<128x512xf32>, vector<16x512xf32> -> vector<16x512xf32>
    %c0_5 = arith.constant 0 : index
    %c0_6 = arith.constant 0 : index
    %4 = vector.load %arg3[%c0_5, %c0_6] : memref<1x512xf32, #tpu.memory_space<vmem>>, vector<1x512xf32>
    %5 = vector.broadcast %4 : vector<1x512xf32> to vector<16x512xf32>
    %6 = arith.addf %3, %5 : vector<16x512xf32>
    %cst_7 = arith.constant 0.000000e+00 : f32
    %7 = vector.broadcast %cst_7 : f32 to vector<2x128xf32>
    %cst_8 = arith.constant 0.000000e+00 : f32
    %8 = vector.broadcast %cst_8 : f32 to vector<2x128xf32>
    %9 = vector.extract_strided_slice %6 {offsets = [0, 0], sizes = [2, 512], strides = [1, 1]} : vector<16x512xf32> to vector<2x512xf32>
    %cst_9 = arith.constant dense<0.000000e+00> : vector<2x512xf32>
    %10 = tpu.matmul %8, %0, %cst_9 {dimension_numbers = #tpu.dot_dimension_numbers<[1], [0], [0], [1], [0, 0, 1, 1], [], []>} : vector<2x128xf32>, vector<128x512xf32>, vector<2x512xf32> -> vector<2x512xf32>
    %11 = arith.addf %9, %10 : vector<2x512xf32>
    %12 = vector.extract_strided_slice %11 {offsets = [0, 0], sizes = [2, 128], strides = [1, 1]} : vector<2x512xf32> to vector<2x128xf32>
    %13 = arith.negf %12 : vector<2x128xf32>
    %14 = math.exp %13 : vector<2x128xf32>
    %cst_10 = arith.constant 1.000000e+00 : f32
    %15 = vector.broadcast %cst_10 : f32 to vector<2x128xf32>
    %16 = arith.addf %15, %14 : vector<2x128xf32>
    %17 = arith.divf %15, %16 : vector<2x128xf32>
    %18 = vector.extract_strided_slice %11 {offsets = [0, 128], sizes = [2, 128], strides = [1, 1]} : vector<2x512xf32> to vector<2x128xf32>
    %19 = arith.negf %18 : vector<2x128xf32>
    %20 = math.exp %19 : vector<2x128xf32>
    %cst_11 = arith.constant 1.000000e+00 : f32
    %21 = vector.broadcast %cst_11 : f32 to vector<2x128xf32>
    %22 = arith.addf %21, %20 : vector<2x128xf32>
    %23 = arith.divf %21, %22 : vector<2x128xf32>
    %24 = vector.extract_strided_slice %11 {offsets = [0, 256], sizes = [2, 128], strides = [1, 1]} : vector<2x512xf32> to vector<2x128xf32>
    %25 = math.tanh %24 : vector<2x128xf32>
    %26 = vector.extract_strided_slice %11 {offsets = [0, 384], sizes = [2, 128], strides = [1, 1]} : vector<2x512xf32> to vector<2x128xf32>
    %27 = arith.negf %26 : vector<2x128xf32>
    %28 = math.exp %27 : vector<2x128xf32>
    %cst_12 = arith.constant 1.000000e+00 : f32
    %29 = vector.broadcast %cst_12 : f32 to vector<2x128xf32>
    %30 = arith.addf %29, %28 : vector<2x128xf32>
    %31 = arith.divf %29, %30 : vector<2x128xf32>
    %32 = arith.mulf %23, %7 : vector<2x128xf32>
    %33 = arith.mulf %17, %25 : vector<2x128xf32>
    %34 = arith.addf %32, %33 : vector<2x128xf32>
    %35 = math.tanh %34 : vector<2x128xf32>
    %36 = arith.mulf %31, %35 : vector<2x128xf32>
    %c0_13 = arith.constant 0 : index
    %c0_14 = arith.constant 0 : index
    %c0_15 = arith.constant 0 : index
    %37 = vector.load %arg4[%c0_13, %c0_14, %c0_15] : memref<2x8x128xf32, #tpu.memory_space<vmem>>, vector<2x1x128xf32>
    %38 = vector.shape_cast %37 : vector<2x1x128xf32> to vector<2x128xf32>
    %39 = vector.shape_cast %36 : vector<2x128xf32> to vector<2x1x128xf32>
    tpu.vector_store %arg4[%c0_13, %c0_14, %c0_15], %39 {strides = array<i32>} : memref<2x8x128xf32, #tpu.memory_space<vmem>>, vector<2x1x128xf32>,
    %40 = vector.extract_strided_slice %6 {offsets = [2, 0], sizes = [2, 512], strides = [1, 1]} : vector<16x512xf32> to vector<2x512xf32>
    %cst_16 = arith.constant dense<0.000000e+00> : vector<2x512xf32>
    %41 = tpu.matmul %36, %0, %cst_16 {dimension_numbers = #tpu.dot_dimension_numbers<[1], [0], [0], [1], [0, 0, 1, 1], [], []>} : vector<2x128xf32>, vector<128x512xf32>, vector<2x512xf32> -> vector<2x512xf32>
    %42 = arith.addf %40, %41 : vector<2x512xf32>
    %43 = vector.extract_strided_slice %42 {offsets = [0, 0], sizes = [2, 128], strides = [1, 1]} : vector<2x512xf32> to vector<2x128xf32>
    %44 = arith.negf %43 : vector<2x128xf32>
    %45 = math.exp %44 : vector<2x128xf32>
    %cst_17 = arith.constant 1.000000e+00 : f32
    %46 = vector.broadcast %cst_17 : f32 to vector<2x128xf32>
    %47 = arith.addf %46, %45 : vector<2x128xf32>
    %48 = arith.divf %46, %47 : vector<2x128xf32>
    %49 = vector.extract_strided_slice %42 {offsets = [0, 128], sizes = [2, 128], strides = [1, 1]} : vector<2x512xf32> to vector<2x128xf32>
    %50 = arith.negf %49 : vector<2x128xf32>
    %51 = math.exp %50 : vector<2x128xf32>
    %cst_18 = arith.constant 1.000000e+00 : f32
    %52 = vector.broadcast %cst_18 : f32 to vector<2x128xf32>
    %53 = arith.addf %52, %51 : vector<2x128xf32>
    %54 = arith.divf %52, %53 : vector<2x128xf32>
    %55 = vector.extract_strided_slice %42 {offsets = [0, 256], sizes = [2, 128], strides = [1, 1]} : vector<2x512xf32> to vector<2x128xf32>
    %56 = math.tanh %55 : vector<2x128xf32>
    %57 = vector.extract_strided_slice %42 {offsets = [0, 384], sizes = [2, 128], strides = [1, 1]} : vector<2x512xf32> to vector<2x128xf32>
    %58 = arith.negf %57 : vector<2x128xf32>
    %59 = math.exp %58 : vector<2x128xf32>
    %cst_19 = arith.constant 1.000000e+00 : f32
    %60 = vector.broadcast %cst_19 : f32 to vector<2x128xf32>
    %61 = arith.addf %60, %59 : vector<2x128xf32>
    %62 = arith.divf %60, %61 : vector<2x128xf32>
    %63 = arith.mulf %54, %34 : vector<2x128xf32>
    %64 = arith.mulf %48, %56 : vector<2x128xf32>
    %65 = arith.addf %63, %64 : vector<2x128xf32>
    %66 = math.tanh %65 : vector<2x128xf32>
    %67 = arith.mulf %62, %66 : vector<2x128xf32>
    %c0_20 = arith.constant 0 : index
    %c1 = arith.constant 1 : index
    %c0_21 = arith.constant 0 : index
    %68 = vector.load %arg4[%c0_20, %c1, %c0_21] : memref<2x8x128xf32, #tpu.memory_space<vmem>>, vector<2x1x128xf32>
    %69 = vector.shape_cast %68 : vector<2x1x128xf32> to vector<2x128xf32>
    %70 = vector.shape_cast %67 : vector<2x128xf32> to vector<2x1x128xf32>
    tpu.vector_store %arg4[%c0_20, %c1, %c0_21], %70 {strides = array<i32>} : memref<2x8x128xf32, #tpu.memory_space<vmem>>, vector<2x1x128xf32>,
    %71 = vector.extract_strided_slice %6 {offsets = [4, 0], sizes = [2, 512], strides = [1, 1]} : vector<16x512xf32> to vector<2x512xf32>
    %cst_22 = arith.constant dense<0.000000e+00> : vector<2x512xf32>
    %72 = tpu.matmul %67, %0, %cst_22 {dimension_numbers = #tpu.dot_dimension_numbers<[1], [0], [0], [1], [0, 0, 1, 1], [], []>} : vector<2x128xf32>, vector<128x512xf32>, vector<2x512xf32> -> vector<2x512xf32>
    %73 = arith.addf %71, %72 : vector<2x512xf32>
    %74 = vector.extract_strided_slice %73 {offsets = [0, 0], sizes = [2, 128], strides = [1, 1]} : vector<2x512xf32> to vector<2x128xf32>
    %75 = arith.negf %74 : vector<2x128xf32>
    %76 = math.exp %75 : vector<2x128xf32>
    %cst_23 = arith.constant 1.000000e+00 : f32
    %77 = vector.broadcast %cst_23 : f32 to vector<2x128xf32>
    %78 = arith.addf %77, %76 : vector<2x128xf32>
    %79 = arith.divf %77, %78 : vector<2x128xf32>
    %80 = vector.extract_strided_slice %73 {offsets = [0, 128], sizes = [2, 128], strides = [1, 1]} : vector<2x512xf32> to vector<2x128xf32>
    %81 = arith.negf %80 : vector<2x128xf32>
    %82 = math.exp %81 : vector<2x128xf32>
    %cst_24 = arith.constant 1.000000e+00 : f32
    %83 = vector.broadcast %cst_24 : f32 to vector<2x128xf32>
    %84 = arith.addf %83, %82 : vector<2x128xf32>
    %85 = arith.divf %83, %84 : vector<2x128xf32>
    %86 = vector.extract_strided_slice %73 {offsets = [0, 256], sizes = [2, 128], strides = [1, 1]} : vector<2x512xf32> to vector<2x128xf32>
    %87 = math.tanh %86 : vector<2x128xf32>
    %88 = vector.extract_strided_slice %73 {offsets = [0, 384], sizes = [2, 128], strides = [1, 1]} : vector<2x512xf32> to vector<2x128xf32>
    %89 = arith.negf %88 : vector<2x128xf32>
    %90 = math.exp %89 : vector<2x128xf32>
    %cst_25 = arith.constant 1.000000e+00 : f32
    %91 = vector.broadcast %cst_25 : f32 to vector<2x128xf32>
    %92 = arith.addf %91, %90 : vector<2x128xf32>
    %93 = arith.divf %91, %92 : vector<2x128xf32>
    %94 = arith.mulf %85, %65 : vector<2x128xf32>
    %95 = arith.mulf %79, %87 : vector<2x128xf32>
    %96 = arith.addf %94, %95 : vector<2x128xf32>
    %97 = math.tanh %96 : vector<2x128xf32>
    %98 = arith.mulf %93, %97 : vector<2x128xf32>
    %c0_26 = arith.constant 0 : index
    %c2 = arith.constant 2 : index
    %c0_27 = arith.constant 0 : index
    %99 = vector.load %arg4[%c0_26, %c2, %c0_27] : memref<2x8x128xf32, #tpu.memory_space<vmem>>, vector<2x1x128xf32>
    %100 = vector.shape_cast %99 : vector<2x1x128xf32> to vector<2x128xf32>
    %101 = vector.shape_cast %98 : vector<2x128xf32> to vector<2x1x128xf32>
    tpu.vector_store %arg4[%c0_26, %c2, %c0_27], %101 {strides = array<i32>} : memref<2x8x128xf32, #tpu.memory_space<vmem>>, vector<2x1x128xf32>,
    %102 = vector.extract_strided_slice %6 {offsets = [6, 0], sizes = [2, 512], strides = [1, 1]} : vector<16x512xf32> to vector<2x512xf32>
    %cst_28 = arith.constant dense<0.000000e+00> : vector<2x512xf32>
    %103 = tpu.matmul %98, %0, %cst_28 {dimension_numbers = #tpu.dot_dimension_numbers<[1], [0], [0], [1], [0, 0, 1, 1], [], []>} : vector<2x128xf32>, vector<128x512xf32>, vector<2x512xf32> -> vector<2x512xf32>
    %104 = arith.addf %102, %103 : vector<2x512xf32>
    %105 = vector.extract_strided_slice %104 {offsets = [0, 0], sizes = [2, 128], strides = [1, 1]} : vector<2x512xf32> to vector<2x128xf32>
    %106 = arith.negf %105 : vector<2x128xf32>
    %107 = math.exp %106 : vector<2x128xf32>
    %cst_29 = arith.constant 1.000000e+00 : f32
    %108 = vector.broadcast %cst_29 : f32 to vector<2x128xf32>
    %109 = arith.addf %108, %107 : vector<2x128xf32>
    %110 = arith.divf %108, %109 : vector<2x128xf32>
    %111 = vector.extract_strided_slice %104 {offsets = [0, 128], sizes = [2, 128], strides = [1, 1]} : vector<2x512xf32> to vector<2x128xf32>
    %112 = arith.negf %111 : vector<2x128xf32>
    %113 = math.exp %112 : vector<2x128xf32>
    %cst_30 = arith.constant 1.000000e+00 : f32
    %114 = vector.broadcast %cst_30 : f32 to vector<2x128xf32>
    %115 = arith.addf %114, %113 : vector<2x128xf32>
    %116 = arith.divf %114, %115 : vector<2x128xf32>
    %117 = vector.extract_strided_slice %104 {offsets = [0, 256], sizes = [2, 128], strides = [1, 1]} : vector<2x512xf32> to vector<2x128xf32>
    %118 = math.tanh %117 : vector<2x128xf32>
    %119 = vector.extract_strided_slice %104 {offsets = [0, 384], sizes = [2, 128], strides = [1, 1]} : vector<2x512xf32> to vector<2x128xf32>
    %120 = arith.negf %119 : vector<2x128xf32>
    %121 = math.exp %120 : vector<2x128xf32>
    %cst_31 = arith.constant 1.000000e+00 : f32
    %122 = vector.broadcast %cst_31 : f32 to vector<2x128xf32>
    %123 = arith.addf %122, %121 : vector<2x128xf32>
    %124 = arith.divf %122, %123 : vector<2x128xf32>
    %125 = arith.mulf %116, %96 : vector<2x128xf32>
    %126 = arith.mulf %110, %118 : vector<2x128xf32>
    %127 = arith.addf %125, %126 : vector<2x128xf32>
    %128 = math.tanh %127 : vector<2x128xf32>
    %129 = arith.mulf %124, %128 : vector<2x128xf32>
    %c0_32 = arith.constant 0 : index
    %c3 = arith.constant 3 : index
    %c0_33 = arith.constant 0 : index
    %130 = vector.load %arg4[%c0_32, %c3, %c0_33] : memref<2x8x128xf32, #tpu.memory_space<vmem>>, vector<2x1x128xf32>
    %131 = vector.shape_cast %130 : vector<2x1x128xf32> to vector<2x128xf32>
    %132 = vector.shape_cast %129 : vector<2x128xf32> to vector<2x1x128xf32>
    tpu.vector_store %arg4[%c0_32, %c3, %c0_33], %132 {strides = array<i32>} : memref<2x8x128xf32, #tpu.memory_space<vmem>>, vector<2x1x128xf32>,
    %133 = vector.extract_strided_slice %6 {offsets = [8, 0], sizes = [2, 512], strides = [1, 1]} : vector<16x512xf32> to vector<2x512xf32>
    %cst_34 = arith.constant dense<0.000000e+00> : vector<2x512xf32>
    %134 = tpu.matmul %129, %0, %cst_34 {dimension_numbers = #tpu.dot_dimension_numbers<[1], [0], [0], [1], [0, 0, 1, 1], [], []>} : vector<2x128xf32>, vector<128x512xf32>, vector<2x512xf32> -> vector<2x512xf32>
    %135 = arith.addf %133, %134 : vector<2x512xf32>
    %136 = vector.extract_strided_slice %135 {offsets = [0, 0], sizes = [2, 128], strides = [1, 1]} : vector<2x512xf32> to vector<2x128xf32>
    %137 = arith.negf %136 : vector<2x128xf32>
    %138 = math.exp %137 : vector<2x128xf32>
    %cst_35 = arith.constant 1.000000e+00 : f32
    %139 = vector.broadcast %cst_35 : f32 to vector<2x128xf32>
    %140 = arith.addf %139, %138 : vector<2x128xf32>
    %141 = arith.divf %139, %140 : vector<2x128xf32>
    %142 = vector.extract_strided_slice %135 {offsets = [0, 128], sizes = [2, 128], strides = [1, 1]} : vector<2x512xf32> to vector<2x128xf32>
    %143 = arith.negf %142 : vector<2x128xf32>
    %144 = math.exp %143 : vector<2x128xf32>
    %cst_36 = arith.constant 1.000000e+00 : f32
    %145 = vector.broadcast %cst_36 : f32 to vector<2x128xf32>
    %146 = arith.addf %145, %144 : vector<2x128xf32>
    %147 = arith.divf %145, %146 : vector<2x128xf32>
    %148 = vector.extract_strided_slice %135 {offsets = [0, 256], sizes = [2, 128], strides = [1, 1]} : vector<2x512xf32> to vector<2x128xf32>
    %149 = math.tanh %148 : vector<2x128xf32>
    %150 = vector.extract_strided_slice %135 {offsets = [0, 384], sizes = [2, 128], strides = [1, 1]} : vector<2x512xf32> to vector<2x128xf32>
    %151 = arith.negf %150 : vector<2x128xf32>
    %152 = math.exp %151 : vector<2x128xf32>
    %cst_37 = arith.constant 1.000000e+00 : f32
    %153 = vector.broadcast %cst_37 : f32 to vector<2x128xf32>
    %154 = arith.addf %153, %152 : vector<2x128xf32>
    %155 = arith.divf %153, %154 : vector<2x128xf32>
    %156 = arith.mulf %147, %127 : vector<2x128xf32>
    %157 = arith.mulf %141, %149 : vector<2x128xf32>
    %158 = arith.addf %156, %157 : vector<2x128xf32>
    %159 = math.tanh %158 : vector<2x128xf32>
    %160 = arith.mulf %155, %159 : vector<2x128xf32>
    %c0_38 = arith.constant 0 : index
    %c4 = arith.constant 4 : index
    %c0_39 = arith.constant 0 : index
    %161 = vector.load %arg4[%c0_38, %c4, %c0_39] : memref<2x8x128xf32, #tpu.memory_space<vmem>>, vector<2x1x128xf32>
    %162 = vector.shape_cast %161 : vector<2x1x128xf32> to vector<2x128xf32>
    %163 = vector.shape_cast %160 : vector<2x128xf32> to vector<2x1x128xf32>
    tpu.vector_store %arg4[%c0_38, %c4, %c0_39], %163 {strides = array<i32>} : memref<2x8x128xf32, #tpu.memory_space<vmem>>, vector<2x1x128xf32>,
    %164 = vector.extract_strided_slice %6 {offsets = [10, 0], sizes = [2, 512], strides = [1, 1]} : vector<16x512xf32> to vector<2x512xf32>
    %cst_40 = arith.constant dense<0.000000e+00> : vector<2x512xf32>
    %165 = tpu.matmul %160, %0, %cst_40 {dimension_numbers = #tpu.dot_dimension_numbers<[1], [0], [0], [1], [0, 0, 1, 1], [], []>} : vector<2x128xf32>, vector<128x512xf32>, vector<2x512xf32> -> vector<2x512xf32>
    %166 = arith.addf %164, %165 : vector<2x512xf32>
    %167 = vector.extract_strided_slice %166 {offsets = [0, 0], sizes = [2, 128], strides = [1, 1]} : vector<2x512xf32> to vector<2x128xf32>
    %168 = arith.negf %167 : vector<2x128xf32>
    %169 = math.exp %168 : vector<2x128xf32>
    %cst_41 = arith.constant 1.000000e+00 : f32
    %170 = vector.broadcast %cst_41 : f32 to vector<2x128xf32>
    %171 = arith.addf %170, %169 : vector<2x128xf32>
    %172 = arith.divf %170, %171 : vector<2x128xf32>
    %173 = vector.extract_strided_slice %166 {offsets = [0, 128], sizes = [2, 128], strides = [1, 1]} : vector<2x512xf32> to vector<2x128xf32>
    %174 = arith.negf %173 : vector<2x128xf32>
    %175 = math.exp %174 : vector<2x128xf32>
    %cst_42 = arith.constant 1.000000e+00 : f32
    %176 = vector.broadcast %cst_42 : f32 to vector<2x128xf32>
    %177 = arith.addf %176, %175 : vector<2x128xf32>
    %178 = arith.divf %176, %177 : vector<2x128xf32>
    %179 = vector.extract_strided_slice %166 {offsets = [0, 256], sizes = [2, 128], strides = [1, 1]} : vector<2x512xf32> to vector<2x128xf32>
    %180 = math.tanh %179 : vector<2x128xf32>
    %181 = vector.extract_strided_slice %166 {offsets = [0, 384], sizes = [2, 128], strides = [1, 1]} : vector<2x512xf32> to vector<2x128xf32>
    %182 = arith.negf %181 : vector<2x128xf32>
    %183 = math.exp %182 : vector<2x128xf32>
    %cst_43 = arith.constant 1.000000e+00 : f32
    %184 = vector.broadcast %cst_43 : f32 to vector<2x128xf32>
    %185 = arith.addf %184, %183 : vector<2x128xf32>
    %186 = arith.divf %184, %185 : vector<2x128xf32>
    %187 = arith.mulf %178, %158 : vector<2x128xf32>
    %188 = arith.mulf %172, %180 : vector<2x128xf32>
    %189 = arith.addf %187, %188 : vector<2x128xf32>
    %190 = math.tanh %189 : vector<2x128xf32>
    %191 = arith.mulf %186, %190 : vector<2x128xf32>
    %c0_44 = arith.constant 0 : index
    %c5 = arith.constant 5 : index
    %c0_45 = arith.constant 0 : index
    %192 = vector.load %arg4[%c0_44, %c5, %c0_45] : memref<2x8x128xf32, #tpu.memory_space<vmem>>, vector<2x1x128xf32>
    %193 = vector.shape_cast %192 : vector<2x1x128xf32> to vector<2x128xf32>
    %194 = vector.shape_cast %191 : vector<2x128xf32> to vector<2x1x128xf32>
    tpu.vector_store %arg4[%c0_44, %c5, %c0_45], %194 {strides = array<i32>} : memref<2x8x128xf32, #tpu.memory_space<vmem>>, vector<2x1x128xf32>,
    %195 = vector.extract_strided_slice %6 {offsets = [12, 0], sizes = [2, 512], strides = [1, 1]} : vector<16x512xf32> to vector<2x512xf32>
    %cst_46 = arith.constant dense<0.000000e+00> : vector<2x512xf32>
    %196 = tpu.matmul %191, %0, %cst_46 {dimension_numbers = #tpu.dot_dimension_numbers<[1], [0], [0], [1], [0, 0, 1, 1], [], []>} : vector<2x128xf32>, vector<128x512xf32>, vector<2x512xf32> -> vector<2x512xf32>
    %197 = arith.addf %195, %196 : vector<2x512xf32>
    %198 = vector.extract_strided_slice %197 {offsets = [0, 0], sizes = [2, 128], strides = [1, 1]} : vector<2x512xf32> to vector<2x128xf32>
    %199 = arith.negf %198 : vector<2x128xf32>
    %200 = math.exp %199 : vector<2x128xf32>
    %cst_47 = arith.constant 1.000000e+00 : f32
    %201 = vector.broadcast %cst_47 : f32 to vector<2x128xf32>
    %202 = arith.addf %201, %200 : vector<2x128xf32>
    %203 = arith.divf %201, %202 : vector<2x128xf32>
    %204 = vector.extract_strided_slice %197 {offsets = [0, 128], sizes = [2, 128], strides = [1, 1]} : vector<2x512xf32> to vector<2x128xf32>
    %205 = arith.negf %204 : vector<2x128xf32>
    %206 = math.exp %205 : vector<2x128xf32>
    %cst_48 = arith.constant 1.000000e+00 : f32
    %207 = vector.broadcast %cst_48 : f32 to vector<2x128xf32>
    %208 = arith.addf %207, %206 : vector<2x128xf32>
    %209 = arith.divf %207, %208 : vector<2x128xf32>
    %210 = vector.extract_strided_slice %197 {offsets = [0, 256], sizes = [2, 128], strides = [1, 1]} : vector<2x512xf32> to vector<2x128xf32>
    %211 = math.tanh %210 : vector<2x128xf32>
    %212 = vector.extract_strided_slice %197 {offsets = [0, 384], sizes = [2, 128], strides = [1, 1]} : vector<2x512xf32> to vector<2x128xf32>
    %213 = arith.negf %212 : vector<2x128xf32>
    %214 = math.exp %213 : vector<2x128xf32>
    %cst_49 = arith.constant 1.000000e+00 : f32
    %215 = vector.broadcast %cst_49 : f32 to vector<2x128xf32>
    %216 = arith.addf %215, %214 : vector<2x128xf32>
    %217 = arith.divf %215, %216 : vector<2x128xf32>
    %218 = arith.mulf %209, %189 : vector<2x128xf32>
    %219 = arith.mulf %203, %211 : vector<2x128xf32>
    %220 = arith.addf %218, %219 : vector<2x128xf32>
    %221 = math.tanh %220 : vector<2x128xf32>
    %222 = arith.mulf %217, %221 : vector<2x128xf32>
    %c0_50 = arith.constant 0 : index
    %c6 = arith.constant 6 : index
    %c0_51 = arith.constant 0 : index
    %223 = vector.load %arg4[%c0_50, %c6, %c0_51] : memref<2x8x128xf32, #tpu.memory_space<vmem>>, vector<2x1x128xf32>
    %224 = vector.shape_cast %223 : vector<2x1x128xf32> to vector<2x128xf32>
    %225 = vector.shape_cast %222 : vector<2x128xf32> to vector<2x1x128xf32>
    tpu.vector_store %arg4[%c0_50, %c6, %c0_51], %225 {strides = array<i32>} : memref<2x8x128xf32, #tpu.memory_space<vmem>>, vector<2x1x128xf32>,
    %226 = vector.extract_strided_slice %6 {offsets = [14, 0], sizes = [2, 512], strides = [1, 1]} : vector<16x512xf32> to vector<2x512xf32>
    %cst_52 = arith.constant dense<0.000000e+00> : vector<2x512xf32>
    %227 = tpu.matmul %222, %0, %cst_52 {dimension_numbers = #tpu.dot_dimension_numbers<[1], [0], [0], [1], [0, 0, 1, 1], [], []>} : vector<2x128xf32>, vector<128x512xf32>, vector<2x512xf32> -> vector<2x512xf32>
    %228 = arith.addf %226, %227 : vector<2x512xf32>
    %229 = vector.extract_strided_slice %228 {offsets = [0, 0], sizes = [2, 128], strides = [1, 1]} : vector<2x512xf32> to vector<2x128xf32>
    %230 = arith.negf %229 : vector<2x128xf32>
    %231 = math.exp %230 : vector<2x128xf32>
    %cst_53 = arith.constant 1.000000e+00 : f32
    %232 = vector.broadcast %cst_53 : f32 to vector<2x128xf32>
    %233 = arith.addf %232, %231 : vector<2x128xf32>
    %234 = arith.divf %232, %233 : vector<2x128xf32>
    %235 = vector.extract_strided_slice %228 {offsets = [0, 128], sizes = [2, 128], strides = [1, 1]} : vector<2x512xf32> to vector<2x128xf32>
    %236 = arith.negf %235 : vector<2x128xf32>
    %237 = math.exp %236 : vector<2x128xf32>
    %cst_54 = arith.constant 1.000000e+00 : f32
    %238 = vector.broadcast %cst_54 : f32 to vector<2x128xf32>
    %239 = arith.addf %238, %237 : vector<2x128xf32>
    %240 = arith.divf %238, %239 : vector<2x128xf32>
    %241 = vector.extract_strided_slice %228 {offsets = [0, 256], sizes = [2, 128], strides = [1, 1]} : vector<2x512xf32> to vector<2x128xf32>
    %242 = math.tanh %241 : vector<2x128xf32>
    %243 = vector.extract_strided_slice %228 {offsets = [0, 384], sizes = [2, 128], strides = [1, 1]} : vector<2x512xf32> to vector<2x128xf32>
    %244 = arith.negf %243 : vector<2x128xf32>
    %245 = math.exp %244 : vector<2x128xf32>
    %cst_55 = arith.constant 1.000000e+00 : f32
    %246 = vector.broadcast %cst_55 : f32 to vector<2x128xf32>
    %247 = arith.addf %246, %245 : vector<2x128xf32>
    %248 = arith.divf %246, %247 : vector<2x128xf32>
    %249 = arith.mulf %240, %220 : vector<2x128xf32>
    %250 = arith.mulf %234, %242 : vector<2x128xf32>
    %251 = arith.addf %249, %250 : vector<2x128xf32>
    %252 = math.tanh %251 : vector<2x128xf32>
    %253 = arith.mulf %248, %252 : vector<2x128xf32>
    %c0_56 = arith.constant 0 : index
    %c7 = arith.constant 7 : index
    %c0_57 = arith.constant 0 : index
    %254 = vector.load %arg4[%c0_56, %c7, %c0_57] : memref<2x8x128xf32, #tpu.memory_space<vmem>>, vector<2x1x128xf32>
    %255 = vector.shape_cast %254 : vector<2x1x128xf32> to vector<2x128xf32>
    %256 = vector.shape_cast %253 : vector<2x128xf32> to vector<2x1x128xf32>
    tpu.vector_store %arg4[%c0_56, %c7, %c0_57], %256 {strides = array<i32>} : memref<2x8x128xf32, #tpu.memory_space<vmem>>, vector<2x1x128xf32>,
    return
  }
}

</mosaic_0001>

<bundles_post_ra>
// kernel: tpu_custom_call.1
= control target key start
LH: loop header
LB: loop body
LE: loop exit
PB: predicated region body
PF: predicated region fallthrough
CT: control target
= control target key end

     0   :  { %9 = vsyncpa [#allocation3], 0  ;;  %s2935_s0 = inlined_call_operand.hbm [shape: f32[16,128], index: 0, kind: input, shape index: {}]   ;;  %s2936_s1 = inlined_call_operand.hbm [shape: f32[128,512], index: 1, kind: input, shape index: {}]   ;;  %s2937_s2 = inlined_call_operand.hbm [shape: f32[128,512], index: 2, kind: input, shape index: {}]   ;;  %s2938_s3 = inlined_call_operand.hbm [shape: f32[1,512], index: 3, kind: input, shape index: {}]   ;;  %s2939_s4 = inlined_call_operand.hbm [shape: f32[2,8,128], index: 4, kind: output, shape index: {}]  }
   0x1   :  { %10 = vsyncpa [#allocation6], 0 }
   0x2   :  { %11 = vsyncpa [#allocation9], 0  ;;  %s30_s17 = sshll.u32 %s2936_s1, 4  ;;  %s31_s17 = int_to_ptr.hbm [resolvable:$true] %s30_s17 }
   0x3   :  { %12 = vsyncpa [#allocation4], 0  ;;  %s2035_s18 = smov [#allocation5]   ;;  %s17_s22 = sshll.u32 %s2935_s0, 4  ;;  %s18_s22 = int_to_ptr.hbm [resolvable:$true] %s17_s22 }
   0x4   :  { %s32_s19 = sshll.u32 %s2035_s18, 4  ;;  %s2036_s23 = smov 512   ;;  %s33_s19 = int_to_ptr.vmem [resolvable:$true] %s32_s19 }
   0x5   :  { %s2037_s24 = smov 32   ;;  %s2038_s25 = smov [#allocation2]  }
   0x6   :  { %38 = dma.hbm_to_vmem [thread:$0]  %s31_s17, 8192, %s33_s19, [#allocation6], %s2036_s23, %s2036_s23, %s2037_s24  }
   0x7   :  { %s19_s26 = sshll.u32 %s2038_s25, 4  ;;  %s2039_s27 = smov 128   ;;  %s20_s26 = int_to_ptr.vmem [resolvable:$true] %s19_s26 }
   0x8   :  { %s2040_s28 = smov 8   ;;  %s43_s30 = sshll.u32 %s2937_s2, 4  ;;  %s44_s30 = int_to_ptr.hbm [resolvable:$true] %s43_s30 }
   0x9   :  { %25 = dma.hbm_to_vmem [thread:$0]  %s18_s22, 256, %s20_s26, [#allocation3], %s2039_s27, %s2039_s27, %s2040_s28  }
   0xa   :  { %s2041_s5 = smov [#allocation7]   ;;  %s57_s8 = sshll.u32 %s2938_s3, 4  ;;  %s58_s8 = int_to_ptr.hbm [resolvable:$true] %s57_s8 }
   0xb   :  { %s45_s0 = sshll.u32 %s2041_s5, 4  ;;  %s2042_s9 = smov [#allocation8]   ;;  %s46_s0 = int_to_ptr.vmem [resolvable:$true] %s45_s0 }
   0xc   :  { %51 = dma.hbm_to_vmem [thread:$0]  %s44_s30, 8192, %s46_s0, [#allocation6], %s2036_s23, %s2036_s23, %s2037_s24  }
   0xd   :  { %s59_s10 = sshll.u32 %s2042_s9, 4  ;;  %s60_s10 = int_to_ptr.vmem [resolvable:$true] %s59_s10 }
   0xe   :  { %62 = dma.hbm_to_vmem [thread:$0]  %s58_s8, 64, %s60_s10, [#allocation9]  }
   0xf   :  { %2027 = dma.done.wait [#allocation3], 256  }
  0x10   :  { %2028 = vsyncadd [#allocation3], 4294967040 }
  0x11   :  { %2029 = dma.done.wait [#allocation6], 16384  }
  0x12   :  { %2030 = vsyncadd [#allocation6], 4294950912 }
  0x13   :  { %2031 = dma.done.wait [#allocation9], 64  }
  0x14   :  { %2032 = vsyncadd [#allocation9], 4294967232  ;;  %v205_v0 = vld [vmem:[#allocation5 + $0x1e0] sm:$0xff]  ;;  %v206_v1 = vld [vmem:[#allocation5 + $0x1e8] sm:$0xff]  ;;  %s2044_s2 = smov [#allocation10]   ;;  %s1666_s13 = sshll.u32 %s2939_s4, 4  ;;  %s1667_s13 = int_to_ptr.hbm [resolvable:$true] %s1666_s13 }
  0x15   :  { %v208_v2 = vld [vmem:[#allocation5 + $0x1f8] sm:$0xff]  ;;  %219 = vmatpush.msra.mxu0 %v205_v0  ;;  %242 = vmatpush.msra.mxu1 %v206_v1  ;;  %v207_v3 = vld [vmem:[#allocation5 + $0x1f0] sm:$0xff]  ;;  %v201_v4 = vld [vmem:[#allocation5 + $0x1c0] sm:$0xff]  ;;  %s1664_s3 = sshll.u32 %s2044_s2, 4  ;;  %s1665_s3 = int_to_ptr.vmem [resolvable:$true] %s1664_s3 }
  0x16   :  { %v202_v5 = vld [vmem:[#allocation5 + $0x1c8] sm:$0xff]  ;;  %288 = vmatpush.msra.mxu3 %v208_v2  ;;  %265 = vmatpush.msra.mxu2 %v207_v3  ;;  %v204_v6 = vld [vmem:[#allocation5 + $0x1d8] sm:$0xff]  ;;  %v203_v7 = vld [vmem:[#allocation5 + $0x1d0] sm:$0xff] }
  0x17   :  { %v197_v8 = vld [vmem:[#allocation5 + $0x1a0] sm:$0xff]  ;;  %220 = vmatpush.msra.mxu0 %v201_v4  ;;  %243 = vmatpush.msra.mxu1 %v202_v5  ;;  %v198_v9 = vld [vmem:[#allocation5 + $0x1a8] sm:$0xff]  ;;  %v200_v10 = vld [vmem:[#allocation5 + $0x1b8] sm:$0xff] }
  0x18   :  { %v199_v11 = vld [vmem:[#allocation5 + $0x1b0] sm:$0xff]  ;;  %289 = vmatpush.msra.mxu3 %v204_v6  ;;  %266 = vmatpush.msra.mxu2 %v203_v7  ;;  %v193_v12 = vld [vmem:[#allocation5 + $0x180] sm:$0xff]  ;;  %v194_v13 = vld [vmem:[#allocation5 + $0x188] sm:$0xff] }
  0x19   :  { %221 = vmatpush.msra.mxu0 %v197_v8  ;;  %244 = vmatpush.msra.mxu1 %v198_v9  ;;  %v196_v14 = vld [vmem:[#allocation5 + $0x198] sm:$0xff]  ;;  %v195_v15 = vld [vmem:[#allocation5 + $0x190] sm:$0xff]  ;;  %v189_v16 = vld [vmem:[#allocation5 + $0x160] sm:$0xff] }
  0x1a   :  { %290 = vmatpush.msra.mxu3 %v200_v10  ;;  %267 = vmatpush.msra.mxu2 %v199_v11  ;;  %v190_v17 = vld [vmem:[#allocation5 + $0x168] sm:$0xff]  ;;  %v192_v18 = vld [vmem:[#allocation5 + $0x178] sm:$0xff]  ;;  %v191_v19 = vld [vmem:[#allocation5 + $0x170] sm:$0xff] }
  0x1b   :  { %222 = vmatpush.msra.mxu0 %v193_v12  ;;  %245 = vmatpush.msra.mxu1 %v194_v13  ;;  %v185_v20 = vld [vmem:[#allocation5 + $0x140] sm:$0xff]  ;;  %v186_v21 = vld [vmem:[#allocation5 + $0x148] sm:$0xff]  ;;  %v188_v22 = vld [vmem:[#allocation5 + $0x158] sm:$0xff] }
  0x1c   :  { %291 = vmatpush.msra.mxu3 %v196_v14  ;;  %268 = vmatpush.msra.mxu2 %v195_v15  ;;  %v187_v23 = vld [vmem:[#allocation5 + $0x150] sm:$0xff]  ;;  %v181_v24 = vld [vmem:[#allocation5 + $0x120] sm:$0xff]  ;;  %v182_v25 = vld [vmem:[#allocation5 + $0x128] sm:$0xff] }
  0x1d   :  { %223 = vmatpush.msra.mxu0 %v189_v16  ;;  %246 = vmatpush.msra.mxu1 %v190_v17  ;;  %v184_v26 = vld [vmem:[#allocation5 + $0x138] sm:$0xff]  ;;  %v183_v27 = vld [vmem:[#allocation5 + $0x130] sm:$0xff]  ;;  %v177_v28 = vld [vmem:[#allocation5 + $0x100] sm:$0xff] }
  0x1e   :  { %292 = vmatpush.msra.mxu3 %v192_v18  ;;  %269 = vmatpush.msra.mxu2 %v191_v19  ;;  %v178_v29 = vld [vmem:[#allocation5 + $0x108] sm:$0xff]  ;;  %v180_v30 = vld [vmem:[#allocation5 + $0x118] sm:$0xff]  ;;  %v179_v31 = vld [vmem:[#allocation5 + $0x110] sm:$0xff] }
  0x1f   :  { %224 = vmatpush.msra.mxu0 %v185_v20  ;;  %247 = vmatpush.msra.mxu1 %v186_v21  ;;  %v173_v32 = vld [vmem:[#allocation5 + $0xe0] sm:$0xff]  ;;  %v174_v33 = vld [vmem:[#allocation5 + $0xe8] sm:$0xff]  ;;  %v176_v34 = vld [vmem:[#allocation5 + $0xf8] sm:$0xff] }
  0x20   :  { %293 = vmatpush.msra.mxu3 %v188_v22  ;;  %270 = vmatpush.msra.mxu2 %v187_v23  ;;  %v175_v35 = vld [vmem:[#allocation5 + $0xf0] sm:$0xff]  ;;  %v169_v36 = vld [vmem:[#allocation5 + $0xc0] sm:$0xff]  ;;  %v170_v37 = vld [vmem:[#allocation5 + $0xc8] sm:$0xff] }
  0x21   :  { %225 = vmatpush.msra.mxu0 %v181_v24  ;;  %248 = vmatpush.msra.mxu1 %v182_v25  ;;  %v172_v38 = vld [vmem:[#allocation5 + $0xd8] sm:$0xff]  ;;  %v171_v39 = vld [vmem:[#allocation5 + $0xd0] sm:$0xff]  ;;  %v165_v40 = vld [vmem:[#allocation5 + $0xa0] sm:$0xff] }
  0x22   :  { %294 = vmatpush.msra.mxu3 %v184_v26  ;;  %271 = vmatpush.msra.mxu2 %v183_v27  ;;  %v166_v41 = vld [vmem:[#allocation5 + $0xa8] sm:$0xff]  ;;  %v168_v42 = vld [vmem:[#allocation5 + $0xb8] sm:$0xff]  ;;  %v167_v43 = vld [vmem:[#allocation5 + $0xb0] sm:$0xff] }
  0x23   :  { %226 = vmatpush.msra.mxu0 %v177_v28  ;;  %249 = vmatpush.msra.mxu1 %v178_v29  ;;  %v161_v44 = vld [vmem:[#allocation5 + $0x80] sm:$0xff]  ;;  %v162_v45 = vld [vmem:[#allocation5 + $0x88] sm:$0xff]  ;;  %v164_v46 = vld [vmem:[#allocation5 + $0x98] sm:$0xff] }
  0x24   :  { %295 = vmatpush.msra.mxu3 %v180_v30  ;;  %272 = vmatpush.msra.mxu2 %v179_v31  ;;  %v163_v47 = vld [vmem:[#allocation5 + $0x90] sm:$0xff]  ;;  %v157_v48 = vld [vmem:[#allocation5 + $0x60] sm:$0xff]  ;;  %v158_v49 = vld [vmem:[#allocation5 + $0x68] sm:$0xff] }
  0x25   :  { %227 = vmatpush.msra.mxu0 %v173_v32  ;;  %250 = vmatpush.msra.mxu1 %v174_v33  ;;  %v160_v50 = vld [vmem:[#allocation5 + $0x78] sm:$0xff]  ;;  %v159_v51 = vld [vmem:[#allocation5 + $0x70] sm:$0xff]  ;;  %v153_v52 = vld [vmem:[#allocation5 + $0x40] sm:$0xff] }
  0x26   :  { %296 = vmatpush.msra.mxu3 %v176_v34  ;;  %273 = vmatpush.msra.mxu2 %v175_v35  ;;  %v154_v53 = vld [vmem:[#allocation5 + $0x48] sm:$0xff]  ;;  %v156_v54 = vld [vmem:[#allocation5 + $0x58] sm:$0xff]  ;;  %v155_v55 = vld [vmem:[#allocation5 + $0x50] sm:$0xff] }
  0x27   :  { %228 = vmatpush.msra.mxu0 %v169_v36  ;;  %251 = vmatpush.msra.mxu1 %v170_v37  ;;  %v149_v56 = vld [vmem:[#allocation5 + $0x20] sm:$0xff]  ;;  %v150_v57 = vld [vmem:[#allocation5 + $0x28] sm:$0xff]  ;;  %v152_v58 = vld [vmem:[#allocation5 + $0x38] sm:$0xff] }
  0x28   :  { %297 = vmatpush.msra.mxu3 %v172_v38  ;;  %274 = vmatpush.msra.mxu2 %v171_v39  ;;  %v151_v59 = vld [vmem:[#allocation5 + $0x30] sm:$0xff]  ;;  %v145_v60 = vld [vmem:[#allocation5] sm:$0xff]  ;;  %v146_v61 = vld [vmem:[#allocation5 + $0x8] sm:$0xff] }
  0x29   :  { %229 = vmatpush.msra.mxu0 %v165_v40  ;;  %252 = vmatpush.msra.mxu1 %v166_v41  ;;  %v148_v62 = vld [vmem:[#allocation5 + $0x18] sm:$0xff]  ;;  %v147_v63 = vld [vmem:[#allocation5 + $0x10] sm:$0xff]  ;;  %v2085_v0 = vld [vmem:[#allocation7 + $0x1e0] sm:$0xff] }
  0x2a   :  { %298 = vmatpush.msra.mxu3 %v168_v42  ;;  %275 = vmatpush.msra.mxu2 %v167_v43  ;;  %v2087_v1 = vld [vmem:[#allocation7 + $0x1e8] sm:$0xff]  ;;  %v2089_v2 = vld [vmem:[#allocation7 + $0x1f8] sm:$0xff]  ;;  %v2091_v3 = vld [vmem:[#allocation7 + $0x1f0] sm:$0xff] }
  0x2b   :  { %230 = vmatpush.msra.mxu0 %v161_v44  ;;  %253 = vmatpush.msra.mxu1 %v162_v45  ;;  %v2093_v4 = vld [vmem:[#allocation7 + $0x1c0] sm:$0xff]  ;;  %v2095_v5 = vld [vmem:[#allocation7 + $0x1c8] sm:$0xff]  ;;  %v2099_v6 = vld [vmem:[#allocation7 + $0x1d8] sm:$0xff] }
  0x2c   :  { %299 = vmatpush.msra.mxu3 %v164_v46  ;;  %276 = vmatpush.msra.mxu2 %v163_v47  ;;  %v2101_v7 = vld [vmem:[#allocation7 + $0x1d0] sm:$0xff]  ;;  %v2105_v8 = vld [vmem:[#allocation7 + $0x1a0] sm:$0xff]  ;;  %v2107_v9 = vld [vmem:[#allocation7 + $0x1a8] sm:$0xff] }
  0x2d   :  { %231 = vmatpush.msra.mxu0 %v157_v48  ;;  %254 = vmatpush.msra.mxu1 %v158_v49  ;;  %v2111_v10 = vld [vmem:[#allocation7 + $0x1b8] sm:$0xff]  ;;  %v2113_v11 = vld [vmem:[#allocation7 + $0x1b0] sm:$0xff]  ;;  %v2117_v12 = vld [vmem:[#allocation7 + $0x180] sm:$0xff] }
  0x2e   :  { %300 = vmatpush.msra.mxu3 %v160_v50  ;;  %277 = vmatpush.msra.mxu2 %v159_v51  ;;  %v2119_v13 = vld [vmem:[#allocation7 + $0x188] sm:$0xff]  ;;  %v2123_v14 = vld [vmem:[#allocation7 + $0x198] sm:$0xff]  ;;  %v2125_v15 = vld [vmem:[#allocation7 + $0x190] sm:$0xff] }
  0x2f   :  { %232 = vmatpush.msra.mxu0 %v153_v52  ;;  %255 = vmatpush.msra.mxu1 %v154_v53  ;;  %v2129_v16 = vld [vmem:[#allocation7 + $0x160] sm:$0xff]  ;;  %v2131_v17 = vld [vmem:[#allocation7 + $0x168] sm:$0xff]  ;;  %v2135_v18 = vld [vmem:[#allocation7 + $0x178] sm:$0xff] }
  0x30   :  { %301 = vmatpush.msra.mxu3 %v156_v54  ;;  %278 = vmatpush.msra.mxu2 %v155_v55  ;;  %v2137_v19 = vld [vmem:[#allocation7 + $0x170] sm:$0xff]  ;;  %v2141_v20 = vld [vmem:[#allocation7 + $0x140] sm:$0xff]  ;;  %v2143_v21 = vld [vmem:[#allocation7 + $0x148] sm:$0xff] }
  0x31   :  { %233 = vmatpush.msra.mxu0 %v149_v56  ;;  %256 = vmatpush.msra.mxu1 %v150_v57  ;;  %v2147_v22 = vld [vmem:[#allocation7 + $0x158] sm:$0xff]  ;;  %v2149_v23 = vld [vmem:[#allocation7 + $0x150] sm:$0xff]  ;;  %v2153_v24 = vld [vmem:[#allocation7 + $0x120] sm:$0xff] }
  0x32   :  { %302 = vmatpush.msra.mxu3 %v152_v58  ;;  %279 = vmatpush.msra.mxu2 %v151_v59  ;;  %v2155_v25 = vld [vmem:[#allocation7 + $0x128] sm:$0xff]  ;;  %v2159_v26 = vld [vmem:[#allocation7 + $0x138] sm:$0xff]  ;;  %v2161_v27 = vld [vmem:[#allocation7 + $0x130] sm:$0xff] }
  0x33   :  { %234 = vmatpush.msra.mxu0 %v145_v60  ;;  %257 = vmatpush.msra.mxu1 %v146_v61  ;;  %v2165_v28 = vld [vmem:[#allocation7 + $0x100] sm:$0xff]  ;;  %v2167_v29 = vld [vmem:[#allocation7 + $0x108] sm:$0xff]  ;;  %v2171_v30 = vld [vmem:[#allocation7 + $0x118] sm:$0xff] }
  0x34   :  { %303 = vmatpush.msra.mxu3 %v148_v62  ;;  %280 = vmatpush.msra.mxu2 %v147_v63  ;;  %v143_v31 = vld [vmem:[#allocation2] sm:$0xff]  ;;  %v2179_v33 = vld [vmem:[#allocation7 + $0xe0] sm:$0xff]  ;;  %v2182_v34 = vld [vmem:[#allocation7 + $0xe8] sm:$0xff] }
  0x35   :  { %311 = vmatpush.msrb.mxu0 %v2085_v0  ;;  %331 = vmatpush.msrb.mxu1 %v2087_v1  ;;  %v2177_v32 = vld [vmem:[#allocation7 + $0x110] sm:$0xff]  ;;  %v2184_v35 = vld [vmem:[#allocation7 + $0xf8] sm:$0xff]  ;;  %v2190_v37 = vld [vmem:[#allocation7 + $0xc0] sm:$0xff] }
  0x36   :  { %371 = vmatpush.msrb.mxu3 %v2089_v2  ;;  %351 = vmatpush.msrb.mxu2 %v2091_v3  ;;  %v2186_v36 = vld [vmem:[#allocation7 + $0xf0] sm:$0xff]  ;;  %v2192_v38 = vld [vmem:[#allocation7 + $0xc8] sm:$0xff]  ;;  %v2195_v39 = vld [vmem:[#allocation7 + $0xd8] sm:$0xff] }
  0x37   :  { %312 = vmatpush.msrb.mxu0 %v2093_v4  ;;  %332 = vmatpush.msrb.mxu1 %v2095_v5  ;;  %3055 = vst [vmem:[#allocation15_spill] sm:$0xff] %v2195_v39  ;;  %v2197_v40 = vld [vmem:[#allocation7 + $0xd0] sm:$0xff]  ;;  %v2201_v41 = vld [vmem:[#allocation7 + $0xa0] sm:$0xff]  ;;  %v2203_v42 = vld [vmem:[#allocation7 + $0xa8] sm:$0xff] }
  0x38   :  { %372 = vmatpush.msrb.mxu3 %v2099_v6  ;;  %352 = vmatpush.msrb.mxu2 %v2101_v7  ;;  %3056 = vst [vmem:[#allocation16_spill] sm:$0xff] %v2201_v41  ;;  %v2207_v43 = vld [vmem:[#allocation7 + $0xb8] sm:$0xff]  ;;  %v2209_v44 = vld [vmem:[#allocation7 + $0xb0] sm:$0xff]  ;;  %v2213_v45 = vld [vmem:[#allocation7 + $0x80] sm:$0xff] }
  0x39   :  { %313 = vmatpush.msrb.mxu0 %v2105_v8  ;;  %333 = vmatpush.msrb.mxu1 %v2107_v9  ;;  %3057 = vst [vmem:[#allocation17_spill] sm:$0xff] %v2203_v42  ;;  %v2215_v46 = vld [vmem:[#allocation7 + $0x88] sm:$0xff]  ;;  %v2219_v47 = vld [vmem:[#allocation7 + $0x98] sm:$0xff]  ;;  %v2225_v49 = vld [vmem:[#allocation7 + $0x90] sm:$0xff] }
  0x3a   :  { %373 = vmatpush.msrb.mxu3 %v2111_v10  ;;  %353 = vmatpush.msrb.mxu2 %v2113_v11  ;;  %3058 = vst [vmem:[#allocation18_spill] sm:$0xff] %v2207_v43  ;;  %v144_v48 = vld [vmem:[#allocation2 + $0x8] sm:$0xff]  ;;  %v2227_v50 = vld [vmem:[#allocation7 + $0x60] sm:$0xff]  ;;  %v2230_v51 = vld [vmem:[#allocation7 + $0x68] sm:$0xff] }
  0x3b   :  { %314 = vmatpush.msrb.mxu0 %v2117_v12  ;;  %334 = vmatpush.msrb.mxu1 %v2119_v13  ;;  %3059 = vst [vmem:[#allocation19_spill] sm:$0xff] %v2209_v44  ;;  %v2232_v52 = vld [vmem:[#allocation7 + $0x78] sm:$0xff]  ;;  %v2234_v53 = vld [vmem:[#allocation7 + $0x70] sm:$0xff]  ;;  %v2238_v54 = vld [vmem:[#allocation7 + $0x40] sm:$0xff] }
  0x3c   :  { %374 = vmatpush.msrb.mxu3 %v2123_v14  ;;  %354 = vmatpush.msrb.mxu2 %v2125_v15  ;;  %3060 = vst [vmem:[#allocation20_spill] sm:$0xff] %v2213_v45  ;;  %v2240_v55 = vld [vmem:[#allocation7 + $0x48] sm:$0xff]  ;;  %v2243_v56 = vld [vmem:[#allocation7 + $0x58] sm:$0xff]  ;;  %v2245_v57 = vld [vmem:[#allocation7 + $0x50] sm:$0xff] }
  0x3d   :  { %315 = vmatpush.msrb.mxu0 %v2129_v16  ;;  %335 = vmatpush.msrb.mxu1 %v2131_v17  ;;  %3061 = vst [vmem:[#allocation21_spill] sm:$0xff] %v2215_v46  ;;  %v2249_v58 = vld [vmem:[#allocation7 + $0x20] sm:$0xff]  ;;  %v2251_v59 = vld [vmem:[#allocation7 + $0x28] sm:$0xff]  ;;  %v2255_v60 = vld [vmem:[#allocation7 + $0x38] sm:$0xff] }
  0x3e   :  { %375 = vmatpush.msrb.mxu3 %v2135_v18  ;;  %355 = vmatpush.msrb.mxu2 %v2137_v19  ;;  %3062 = vst [vmem:[#allocation22_spill] sm:$0xff] %v2219_v47  ;;  %v2257_v61 = vld [vmem:[#allocation7 + $0x30] sm:$0xff]  ;;  %v2261_v62 = vld [vmem:[#allocation7] sm:$0xff]  ;;  %v2263_v63 = vld [vmem:[#allocation7 + $0x8] sm:$0xff] }
  0x3f   :  { %316 = vmatpush.msrb.mxu0 %v2141_v20  ;;  %336 = vmatpush.msrb.mxu1 %v2143_v21  ;;  %3063 = vst [vmem:[#allocation23_spill] sm:$0xff] %v2225_v49 }
  0x40   :  { %376 = vmatpush.msrb.mxu3 %v2147_v22  ;;  %356 = vmatpush.msrb.mxu2 %v2149_v23  ;;  %3064 = vst [vmem:[#allocation24_spill] sm:$0xff] %v2227_v50 }
  0x41   :  { %317 = vmatpush.msrb.mxu0 %v2153_v24  ;;  %337 = vmatpush.msrb.mxu1 %v2155_v25  ;;  %3065 = vst [vmem:[#allocation25_spill] sm:$0xff] %v2230_v51 }
  0x42   :  { %377 = vmatpush.msrb.mxu3 %v2159_v26  ;;  %357 = vmatpush.msrb.mxu2 %v2161_v27  ;;  %3066 = vst [vmem:[#allocation26_spill] sm:$0xff] %v2232_v52 }
  0x43   :  { %318 = vmatpush.msrb.mxu0 %v2165_v28  ;;  %338 = vmatpush.msrb.mxu1 %v2167_v29  ;;  %3067 = vst [vmem:[#allocation27_spill] sm:$0xff] %v2234_v53 }
  0x44   :  { %378 = vmatpush.msrb.mxu3 %v2171_v30  ;;  %235 = vmatmul.f32.vlgmr.msra.gmra.mxu0 %v143_v31  ;;  %3068 = vst [vmem:[#allocation28_spill] sm:$0xff] %v2238_v54 }
  0x45   :  { %258 = vmatmul.f32.vlgmr.msra.gmra.mxu1 %v143_v31  ;;  %304 = vmatmul.f32.vlgmr.msra.gmra.mxu3 %v143_v31  ;;  %3069 = vst [vmem:[#allocation29_spill] sm:$0xff] %v2240_v55 }
  0x46   :  { %358 = vmatpush.msrb.mxu2 %v2177_v32  ;;  %319 = vmatpush.msrb.mxu0 %v2179_v33  ;;  %3070 = vst [vmem:[#allocation30_spill] sm:$0xff] %v2243_v56 }
  0x47   :  { %281 = vmatmul.f32.vlgmr.msra.gmra.mxu2 %v143_v31  ;;  %339 = vmatpush.msrb.mxu1 %v2182_v34  ;;  %3071 = vst [vmem:[#allocation31_spill] sm:$0xff] %v2245_v57  ;;  %v2267_v31 = vld [vmem:[#allocation7 + $0x18] sm:$0xff] }
  0x48   :  { %379 = vmatpush.msrb.mxu3 %v2184_v35  ;;  %359 = vmatpush.msrb.mxu2 %v2186_v36  ;;  %3072 = vst [vmem:[#allocation32_spill] sm:$0xff] %v2249_v58 }
  0x49   :  { %320 = vmatpush.msrb.mxu0 %v2190_v37  ;;  %340 = vmatpush.msrb.mxu1 %v2192_v38  ;;  %3073 = vst [vmem:[#allocation33_spill] sm:$0xff] %v2251_v59 }
  0x4a   :  { %380 = vmatpush.msrb.mxu3 %v2195_v39  ;;  %360 = vmatpush.msrb.mxu2 %v2197_v40  ;;  %3074 = vst [vmem:[#allocation34_spill] sm:$0xff] %v2255_v60 }
  0x4b   :  { %321 = vmatpush.msrb.mxu0 %v2201_v41  ;;  %341 = vmatpush.msrb.mxu1 %v2203_v42  ;;  %3075 = vst [vmem:[#allocation35_spill] sm:$0xff] %v2257_v61 }
  0x4c   :  { %381 = vmatpush.msrb.mxu3 %v2207_v43  ;;  %361 = vmatpush.msrb.mxu2 %v2209_v44  ;;  %3076 = vst [vmem:[#allocation36_spill] sm:$0xff] %v2261_v62 }
  0x4d   :  { %322 = vmatpush.msrb.mxu0 %v2213_v45  ;;  %342 = vmatpush.msrb.mxu1 %v2215_v46  ;;  %3077 = vst [vmem:[#allocation37_spill] sm:$0xff] %v2263_v63 }
  0x4e   :  { %382 = vmatpush.msrb.mxu3 %v2219_v47  ;;  %238 = vmatmul.f32.gmra.mxu0 %v144_v48  ;;  %3078 = vst [vmem:[#allocation38_spill] sm:$0xff] %v2267_v31 }
  0x4f   :  { %261 = vmatmul.f32.gmra.mxu1 %v144_v48  ;;  %307 = vmatmul.f32.gmra.mxu3 %v144_v48 }
  0x50   :  { %362 = vmatpush.msrb.mxu2 %v2225_v49  ;;  %323 = vmatpush.msrb.mxu0 %v2227_v50 }
  0x51   :  { %284 = vmatmul.f32.gmra.mxu2 %v144_v48  ;;  %343 = vmatpush.msrb.mxu1 %v2230_v51  ;;  %v2271_v48 = vld [vmem:[#allocation7 + $0x10] sm:$0xff] }
  0x52   :  { %383 = vmatpush.msrb.mxu3 %v2232_v52  ;;  %363 = vmatpush.msrb.mxu2 %v2234_v53  ;;  %3079 = vst [vmem:[#allocation39_spill] sm:$0xff] %v2271_v48 }
  0x53   :  { %324 = vmatpush.msrb.mxu0 %v2238_v54  ;;  %344 = vmatpush.msrb.mxu1 %v2240_v55 }
  0x54   :  { %384 = vmatpush.msrb.mxu3 %v2243_v56  ;;  %364 = vmatpush.msrb.mxu2 %v2245_v57  ;;  %v2043_v56 = vmov 0.0  }
  0x55   :  { %325 = vmatpush.msrb.mxu0 %v2249_v58  ;;  %345 = vmatpush.msrb.mxu1 %v2251_v59 }
  0x56   :  { %385 = vmatpush.msrb.mxu3 %v2255_v60  ;;  %365 = vmatpush.msrb.mxu2 %v2257_v61 }
  0x57   :  { %326 = vmatpush.msrb.mxu0 %v2261_v62  ;;  %346 = vmatpush.msrb.mxu1 %v2263_v63 }
  0x58   :  { %386 = vmatpush.msrb.mxu3 %v2267_v31  ;;  %327 = vmatmul.f32.vlgmr.msrb.gmra.mxu0 %v2043_v56 }
  0x59   :  { %347 = vmatmul.f32.vlgmr.msrb.gmra.mxu1 %v2043_v56  ;;  %366 = vmatpush.msrb.mxu2 %v2271_v48 }
  0x5a   :  { %387 = vmatmul.f32.vlgmr.msrb.gmra.mxu3 %v2043_v56  ;;  %367 = vmatmul.f32.vlgmr.msrb.gmra.mxu2 %v2043_v56  ;;  %v3080_v56 = vld [vmem:[#allocation30_spill] sm:$0xff] }
  0x5b   :  { %463 = vmatpush.msra.mxu0 %v2085_v0  ;;  %483 = vmatpush.msra.mxu1 %v2087_v1 }
  0x5c   :  { %503 = vmatpush.msra.mxu2 %v2091_v3  ;;  %523 = vmatpush.msra.mxu3 %v2089_v2 }
  0x5d   :  { %464 = vmatpush.msra.mxu0 %v2093_v4  ;;  %484 = vmatpush.msra.mxu1 %v2095_v5 }
  0x5e   :  { %504 = vmatpush.msra.mxu2 %v2101_v7  ;;  %524 = vmatpush.msra.mxu3 %v2099_v6 }
  0x5f   :  { %465 = vmatpush.msra.mxu0 %v2105_v8  ;;  %485 = vmatpush.msra.mxu1 %v2107_v9 }
  0x60   :  { %505 = vmatpush.msra.mxu2 %v2113_v11  ;;  %525 = vmatpush.msra.mxu3 %v2111_v10 }
  0x61   :  { %466 = vmatpush.msra.mxu0 %v2117_v12  ;;  %486 = vmatpush.msra.mxu1 %v2119_v13 }
  0x62   :  { %506 = vmatpush.msra.mxu2 %v2125_v15  ;;  %526 = vmatpush.msra.mxu3 %v2123_v14 }
  0x63   :  { %467 = vmatpush.msra.mxu0 %v2129_v16  ;;  %487 = vmatpush.msra.mxu1 %v2131_v17 }
  0x64   :  { %507 = vmatpush.msra.mxu2 %v2137_v19  ;;  %527 = vmatpush.msra.mxu3 %v2135_v18 }
  0x65   :  { %468 = vmatpush.msra.mxu0 %v2141_v20  ;;  %488 = vmatpush.msra.mxu1 %v2143_v21 }
  0x66   :  { %508 = vmatpush.msra.mxu2 %v2149_v23  ;;  %528 = vmatpush.msra.mxu3 %v2147_v22 }
  0x67   :  { %469 = vmatpush.msra.mxu0 %v2153_v24  ;;  %489 = vmatpush.msra.mxu1 %v2155_v25 }
  0x68   :  { %509 = vmatpush.msra.mxu2 %v2161_v27  ;;  %529 = vmatpush.msra.mxu3 %v2159_v26 }
  0x69   :  { %470 = vmatpush.msra.mxu0 %v2165_v28  ;;  %490 = vmatpush.msra.mxu1 %v2167_v29 }
  0x6a   :  { %510 = vmatpush.msra.mxu2 %v2177_v32  ;;  %530 = vmatpush.msra.mxu3 %v2171_v30 }
  0x6b   :  { %471 = vmatpush.msra.mxu0 %v2179_v33  ;;  %491 = vmatpush.msra.mxu1 %v2182_v34 }
  0x6c   :  { %511 = vmatpush.msra.mxu2 %v2186_v36  ;;  %531 = vmatpush.msra.mxu3 %v2184_v35 }
  0x6d   :  { %472 = vmatpush.msra.mxu0 %v2190_v37  ;;  %492 = vmatpush.msra.mxu1 %v2192_v38 }
  0x6e   :  { %512 = vmatpush.msra.mxu2 %v2197_v40  ;;  %532 = vmatpush.msra.mxu3 %v2195_v39 }
  0x6f   :  { %473 = vmatpush.msra.mxu0 %v2201_v41  ;;  %493 = vmatpush.msra.mxu1 %v2203_v42 }
  0x70   :  { %513 = vmatpush.msra.mxu2 %v2209_v44  ;;  %533 = vmatpush.msra.mxu3 %v2207_v43 }
  0x71   :  { %474 = vmatpush.msra.mxu0 %v2213_v45  ;;  %494 = vmatpush.msra.mxu1 %v2215_v46 }
  0x72   :  { %514 = vmatpush.msra.mxu2 %v2225_v49  ;;  %534 = vmatpush.msra.mxu3 %v2219_v47 }
  0x73   :  { %475 = vmatpush.msra.mxu0 %v2227_v50  ;;  %495 = vmatpush.msra.mxu1 %v2230_v51 }
  0x74   :  { %515 = vmatpush.msra.mxu2 %v2234_v53  ;;  %535 = vmatpush.msra.mxu3 %v2232_v52 }
  0x75   :  { %476 = vmatpush.msra.mxu0 %v2238_v54  ;;  %496 = vmatpush.msra.mxu1 %v2240_v55 }
  0x76   :  { %516 = vmatpush.msra.mxu2 %v2245_v57  ;;  %536 = vmatpush.msra.mxu3 %v3080_v56 }
  0x77   :  { %477 = vmatpush.msra.mxu0 %v2249_v58  ;;  %497 = vmatpush.msra.mxu1 %v2251_v59 }
  0x78   :  { %517 = vmatpush.msra.mxu2 %v2257_v61  ;;  %537 = vmatpush.msra.mxu3 %v2255_v60 }
  0x79   :  { %478 = vmatpush.msra.mxu0 %v2261_v62  ;;  %498 = vmatpush.msra.mxu1 %v2263_v63 }
  0x7a   :  { %518 = vmatpush.msra.mxu2 %v2271_v48  ;;  %538 = vmatpush.msra.mxu3 %v2267_v31 }
  0x7b   :  { %637 = vmatpush.msrb.mxu0 %v2085_v0  ;;  %657 = vmatpush.msrb.mxu1 %v2087_v1 }
  0x7c   :  { %677 = vmatpush.msrb.mxu2 %v2091_v3  ;;  %697 = vmatpush.msrb.mxu3 %v2089_v2 }
  0x7d   :  { %638 = vmatpush.msrb.mxu0 %v2093_v4  ;;  %658 = vmatpush.msrb.mxu1 %v2095_v5 }
  0x7e   :  { %678 = vmatpush.msrb.mxu2 %v2101_v7  ;;  %698 = vmatpush.msrb.mxu3 %v2099_v6 }
  0x7f   :  { %639 = vmatpush.msrb.mxu0 %v2105_v8  ;;  %659 = vmatpush.msrb.mxu1 %v2107_v9 }
  0x80   :  { %679 = vmatpush.msrb.mxu2 %v2113_v11  ;;  %699 = vmatpush.msrb.mxu3 %v2111_v10 }
  0x81   :  { %640 = vmatpush.msrb.mxu0 %v2117_v12  ;;  %660 = vmatpush.msrb.mxu1 %v2119_v13 }
  0x82   :  { %680 = vmatpush.msrb.mxu2 %v2125_v15  ;;  %700 = vmatpush.msrb.mxu3 %v2123_v14 }
  0x83   :  { %641 = vmatpush.msrb.mxu0 %v2129_v16  ;;  %661 = vmatpush.msrb.mxu1 %v2131_v17 }
  0x84   :  { %681 = vmatpush.msrb.mxu2 %v2137_v19  ;;  %701 = vmatpush.msrb.mxu3 %v2135_v18 }
  0x85   :  { %642 = vmatpush.msrb.mxu0 %v2141_v20  ;;  %662 = vmatpush.msrb.mxu1 %v2143_v21 }
  0x86   :  { %682 = vmatpush.msrb.mxu2 %v2149_v23  ;;  %702 = vmatpush.msrb.mxu3 %v2147_v22 }
  0x87   :  { %643 = vmatpush.msrb.mxu0 %v2153_v24  ;;  %663 = vmatpush.msrb.mxu1 %v2155_v25 }
  0x88   :  { %683 = vmatpush.msrb.mxu2 %v2161_v27  ;;  %703 = vmatpush.msrb.mxu3 %v2159_v26 }
  0x89   :  { %644 = vmatpush.msrb.mxu0 %v2165_v28  ;;  %664 = vmatpush.msrb.mxu1 %v2167_v29 }
  0x8a   :  { %684 = vmatpush.msrb.mxu2 %v2177_v32  ;;  %704 = vmatpush.msrb.mxu3 %v2171_v30 }
  0x8b   :  { %645 = vmatpush.msrb.mxu0 %v2179_v33  ;;  %665 = vmatpush.msrb.mxu1 %v2182_v34 }
  0x8c   :  { %685 = vmatpush.msrb.mxu2 %v2186_v36  ;;  %705 = vmatpush.msrb.mxu3 %v2184_v35 }
  0x8d   :  { %646 = vmatpush.msrb.mxu0 %v2190_v37  ;;  %666 = vmatpush.msrb.mxu1 %v2192_v38 }
  0x8e   :  { %686 = vmatpush.msrb.mxu2 %v2197_v40  ;;  %706 = vmatpush.msrb.mxu3 %v2195_v39 }
  0x8f   :  { %647 = vmatpush.msrb.mxu0 %v2201_v41  ;;  %667 = vmatpush.msrb.mxu1 %v2203_v42 }
  0x90   :  { %687 = vmatpush.msrb.mxu2 %v2209_v44  ;;  %707 = vmatpush.msrb.mxu3 %v2207_v43 }
  0x91   :  { %648 = vmatpush.msrb.mxu0 %v2213_v45  ;;  %668 = vmatpush.msrb.mxu1 %v2215_v46 }
  0x92   :  { %688 = vmatpush.msrb.mxu2 %v2225_v49  ;;  %708 = vmatpush.msrb.mxu3 %v2219_v47 }
  0x93   :  { %649 = vmatpush.msrb.mxu0 %v2227_v50  ;;  %669 = vmatpush.msrb.mxu1 %v2230_v51 }
  0x94   :  { %689 = vmatpush.msrb.mxu2 %v2234_v53  ;;  %709 = vmatpush.msrb.mxu3 %v2232_v52 }
  0x95   :  { %650 = vmatpush.msrb.mxu0 %v2238_v54  ;;  %670 = vmatpush.msrb.mxu1 %v2240_v55  ;;  %v209_v54 = vld [vmem:[#allocation8] sm:$0xf] }
  0x96   :  { %690 = vmatpush.msrb.mxu2 %v2245_v57  ;;  %710 = vmatpush.msrb.mxu3 %v3080_v56  ;;  %v211_v52 = vperm.slane %v209_v54, 0  ;;  %v212_v53 = vperm.slane %v209_v54, 1 }
  0x97   :  { %651 = vmatpush.msrb.mxu0 %v2249_v58  ;;  %671 = vmatpush.msrb.mxu1 %v2251_v59 }
  0x98   :  { %691 = vmatpush.msrb.mxu2 %v2257_v61  ;;  %711 = vmatpush.msrb.mxu3 %v2255_v60 }
  0x99   :  { %652 = vmatpush.msrb.mxu0 %v2261_v62  ;;  %672 = vmatpush.msrb.mxu1 %v2263_v63  ;;  %v214_v62 = vperm.slane %v209_v54, 3  ;;  %v213_v63 = vperm.slane %v209_v54, 2 }
  0x9a   :  { %692 = vmatpush.msrb.mxu2 %v2271_v48  ;;  %712 = vmatpush.msrb.mxu3 %v2267_v31 }
  0xc1   :  { %v236_v55 = vpop.f32.mrf.mxu0 }
  0xc2   :  { %v259_v57 = vpop.f32.mrf.mxu1  ;;  %v2411_v48 = vadd.f32 %v236_v55, %v211_v52 }
  0xc3   :  { %v2413_v49 = vadd.f32 %v259_v57, %v212_v53 }
  0xc4   :  { %3084 = vst [vmem:[#allocation43_spill] sm:$0xff] %v2411_v48 }
  0xc5   :  { %3085 = vst [vmem:[#allocation44_spill] sm:$0xff] %v2413_v49 }
  0xc8   :  { %v305_v56 = vpop.f32.mrf.mxu3 }
  0xc9   :  { %v2419_v54 = vadd.f32 %v305_v56, %v214_v62 }
  0xca   :  { %v282_v58 = vpop.f32.mrf.mxu2 }
  0xcb   :  { %v239_v59 = vpop.f32.mrf.mxu0  ;;  %3087 = vst [vmem:[#allocation46_spill] sm:$0xff] %v2419_v54 }
  0xcc   :  { %v2405_v51 = vadd.f32 %v239_v59, %v211_v52  ;;  %v262_v61 = vpop.f32.mrf.mxu1 }
  0xcd   :  { %v2407_v60 = vadd.f32 %v262_v61, %v212_v53 }
  0xce   :  { %3081 = vst [vmem:[#allocation40_spill] sm:$0xff] %v2405_v51 }
  0xcf   :  { %3082 = vst [vmem:[#allocation41_spill] sm:$0xff] %v2407_v60 }
  0xd2   :  { %v308_v50 = vpop.f32.mrf.mxu3 }
  0xd3   :  { %v2409_v47 = vadd.f32 %v308_v50, %v214_v62 }
  0xd4   :  { %v285_v31 = vpop.f32.mrf.mxu2 }
  0xd5   :  { %3083 = vst [vmem:[#allocation42_spill] sm:$0xff] %v2409_v47  ;;  %v2415_v46 = vadd.f32 %v285_v31, %v213_v63  ;;  %v328_v45 = vpop.f32.mrf.mxu0 }
  0xd6   :  { %v391_v43 = vadd.f32 %v328_v45, %v2411_v48  ;;  %v348_v59 = vpop.f32.mrf.mxu1  ;;  %v2422_v45 = vadd.f32 %v282_v58, %v213_v63 }
  0xd7   :  { %3086 = vst [vmem:[#allocation45_spill] sm:$0xff] %v2415_v46  ;;  %v392_v51 = vadd.f32 %v348_v59, %v2413_v49 }
  0xd8   :  { %v1681_v61 = vmul.f32 -1.442695, %v391_v43  ;;  %3088 = vst [vmem:[#allocation47_spill] sm:$0xff] %v2422_v45 }
  0xd9   :  { %v1682_v60 = vmul.f32 -1.442695, %v392_v51 }
  0xda   :  { %1715 = vpow2.f32 %v1681_v61 }
  0xdb   :  { %1717 = vpow2.f32 %v1682_v60 }
  0xdd   :  { %v388_v50 = vpop.f32.mrf.mxu3  ;;  %v368_v59 = vpop.f32.mrf.mxu2 }
  0xde   :  { %v394_v52 = vadd.f32 %v388_v50, %v2419_v54  ;;  %v393_v60 = vadd.f32 %v368_v59, %v2422_v45 }
  0xe0   :  { %v1716_v55 = vpop.eup %1715  ;;  %v1683_v53 = vmul.f32 -1.442695, %v394_v52 }
  0xe1   :  { %v1718_v57 = vpop.eup %1717  ;;  %v398_v31 = vadd.f32 1.0, %v1716_v55 }
  0xe2   :  { %v417_v46 = vadd.f32 1.0, %v1718_v57  ;;  %1719 = vpow2.f32 %v1683_v53 }
  0xe3   :  { %1721 = vrcp.f32 %v398_v31  ;;  %v410_v54 = vand.u32 2147483648, %v398_v31  ;;  %v408_v57 = vand.u32 2147483647, %v398_v31  ;;  %vm404_vm2 = vweird.f32 %v398_v31 }
  0xe4   :  { %1723 = vrcp.f32 %v417_v46  ;;  %v429_v55 = vand.u32 2147483648, %v417_v46  ;;  %v427_v63 = vand.u32 2147483647, %v417_v46  ;;  %vm423_vm3 = vweird.f32 %v417_v46 }
  0xe5   :  { %v411_v59 = vor.u32 1.1754944e-38, %v410_v54  ;;  %vm409_vm5 = vcmp.eq.f32.partialorder %v408_v57, 8.507059e+37  ;;  %v3111_v57 = vld [vmem:[#allocation37_spill] sm:$0xff] }
  0xe6   :  { %v430_v48 = vor.u32 1.1754944e-38, %v429_v55  ;;  %vm428_vm7 = vcmp.eq.f32.partialorder %v427_v63, 8.507059e+37  ;;  %v3113_v63 = vld [vmem:[#allocation38_spill] sm:$0xff] }
  0xe8   :  { %v1720_v43 = vpop.eup %1719 }
  0xe9   :  { %v1722_v51 = vpop.eup %1721  ;;  %v437_v61 = vadd.f32 1.0, %v1720_v43 }
  0xea   :  { %v1724_v62 = vpop.eup %1723  ;;  %v400_v56 = vmul.f32 %v1722_v51, %v398_v31  ;;  %vm405_vm0 = vweird.f32 %v1722_v51 }
  0xeb   :  { %v419_v47 = vmul.f32 %v1724_v62, %v417_v46  ;;  %1725 = vrcp.f32 %v437_v61  ;;  %vm424_vm1 = vweird.f32 %v1724_v62  ;;  %vm406_vm4 = vmor %vm404_vm2, %vm405_vm0  ;;  %v449_v54 = vand.u32 2147483648, %v437_v61 }
  0xec   :  { %v401_v50 = vsub.f32 1.0, %v400_v56  ;;  %1727 = vtanh.f32 %v393_v60  ;;  %vm425_vm6 = vmor %vm423_vm3, %vm424_vm1  ;;  %vm443_vm9 = vweird.f32 %v437_v61 }
  0xed   :  { %v420_v52 = vsub.f32 1.0, %v419_v47  ;;  %v450_v55 = vor.u32 1.1754944e-38, %v449_v54 }
  0xee   :  { %v402_v53 = vmul.f32 %v1722_v51, %v401_v50 }
  0xef   :  { %v421_v58 = vmul.f32 %v1724_v62, %v420_v52 }
  0xf0   :  { %v403_v49 = vadd.f32 %v1722_v51, %v402_v53 }
  0xf1   :  { %v1726_v43 = vpop.eup %1725  ;;  %v422_v45 = vadd.f32 %v1724_v62, %v421_v58  ;;  %v3112_v58 = vld [vmem:[#allocation39_spill] sm:$0xff] }
  0xf2   :  { %v439_v44 = vmul.f32 %v1726_v43, %v437_v61  ;;  %v407_v56 = vsel %vm406_vm4, %v1722_v51, %v403_v49  ;;  %v1728_v47 = vpop.eup %1727  ;;  %vm444_vm8 = vweird.f32 %v1726_v43  ;;  %v447_v49 = vand.u32 2147483647, %v437_v61  ;;  %v3110_v61 = vld [vmem:[#allocation36_spill] sm:$0xff] }
  0xf3   :  { %v412_v60 = vsel %vm409_vm5, %v411_v59, %v407_v56  ;;  %v426_v50 = vsel %vm425_vm6, %v1724_v62, %v422_v45  ;;  %vm445_vm10 = vmor %vm443_vm9, %vm444_vm8 }
  0xf4   :  { %v440_v42 = vsub.f32 1.0, %v439_v44  ;;  %v431_v52 = vsel %vm428_vm7, %v430_v48, %v426_v50  ;;  %v454_v41 = vmul.f32 %v1728_v47, %v412_v60  ;;  %vm448_vm11 = vcmp.eq.f32.partialorder %v447_v49, 8.507059e+37  ;;  %v3114_v60 = vld [vmem:[#allocation43_spill] sm:$0xff] }
  0xf5   :  { %v453_v39 = vmul.f32 0.0, %v431_v52  ;;  %v3115_v52 = vld [vmem:[#allocation44_spill] sm:$0xff] }
  0xf6   :  { %v441_v53 = vmul.f32 %v1726_v43, %v440_v42  ;;  %v3109_v42 = vld [vmem:[#allocation34_spill] sm:$0xff] }
  0xf7   :  { %v2425_v31 = vadd.f32 %v454_v41, %v453_v39  ;;  %v3107_v39 = vld [vmem:[#allocation33_spill] sm:$0xff]  ;;  %v3108_v41 = vld [vmem:[#allocation35_spill] sm:$0xff] }
  0xf8   :  { %v442_v46 = vadd.f32 %v1726_v43, %v441_v53 }
  0xf9   :  { %1729 = vtanh.f32 %v2425_v31 }
  0xfa   :  { %v446_v51 = vsel %vm445_vm10, %v1726_v43, %v442_v46 }
  0xfb   :  { %v451_v62 = vsel %vm448_vm11, %v450_v55, %v446_v51  ;;  %v3116_v55 = vld [vmem:[#allocation46_spill] sm:$0xff] }
  0xff   :  { %v1730_v45 = vpop.eup %1729 }
 0x100   :  { %v457_v44 = vmul.f32 %v1730_v45, %v451_v62 }
 0x102   :  { %v459_v48 = vrot.slane %v457_v44, 1  ;;  %461 = vst [vmem:[#allocation10] sm:$0x1] %v457_v44  ;;  %479 = vmatmul.f32.vlgmr.msra.gmra.mxu0 %v457_v44  ;;  %499 = vmatmul.f32.vlgmr.msra.gmra.mxu1 %v457_v44 }
 0x103   :  { %519 = vmatmul.f32.vlgmr.msra.gmra.mxu2 %v457_v44  ;;  %539 = vmatmul.f32.vlgmr.msra.gmra.mxu3 %v457_v44 }
 0x104   :  { %462 = vst [vmem:[#allocation10 + $0x8] sm:$0x1] %v459_v48  ;;  %811 = vmatpush.msra.mxu0 %v2085_v0  ;;  %831 = vmatpush.msra.mxu1 %v2087_v1  ;;  %v3089_v0 = vld [vmem:[#allocation15_spill] sm:$0xff]  ;;  %v3090_v1 = vld [vmem:[#allocation16_spill] sm:$0xff] }
 0x105   :  { %851 = vmatpush.msra.mxu2 %v2091_v3  ;;  %871 = vmatpush.msra.mxu3 %v2089_v2  ;;  %v3091_v2 = vld [vmem:[#allocation17_spill] sm:$0xff]  ;;  %v3092_v3 = vld [vmem:[#allocation19_spill] sm:$0xff] }
 0x106   :  { %812 = vmatpush.msra.mxu0 %v2093_v4  ;;  %832 = vmatpush.msra.mxu1 %v2095_v5  ;;  %v3093_v4 = vld [vmem:[#allocation18_spill] sm:$0xff]  ;;  %v3094_v5 = vld [vmem:[#allocation20_spill] sm:$0xff] }
 0x107   :  { %852 = vmatpush.msra.mxu2 %v2101_v7  ;;  %872 = vmatpush.msra.mxu3 %v2099_v6  ;;  %v3095_v6 = vld [vmem:[#allocation21_spill] sm:$0xff]  ;;  %v3096_v7 = vld [vmem:[#allocation23_spill] sm:$0xff] }
 0x108   :  { %813 = vmatpush.msra.mxu0 %v2105_v8  ;;  %833 = vmatpush.msra.mxu1 %v2107_v9  ;;  %v3097_v8 = vld [vmem:[#allocation22_spill] sm:$0xff]  ;;  %v3098_v9 = vld [vmem:[#allocation24_spill] sm:$0xff] }
 0x109   :  { %853 = vmatpush.msra.mxu2 %v2113_v11  ;;  %873 = vmatpush.msra.mxu3 %v2111_v10  ;;  %v3099_v10 = vld [vmem:[#allocation25_spill] sm:$0xff]  ;;  %v3100_v11 = vld [vmem:[#allocation27_spill] sm:$0xff] }
 0x10a   :  { %814 = vmatpush.msra.mxu0 %v2117_v12  ;;  %834 = vmatpush.msra.mxu1 %v2119_v13  ;;  %v3101_v12 = vld [vmem:[#allocation26_spill] sm:$0xff]  ;;  %v3102_v13 = vld [vmem:[#allocation28_spill] sm:$0xff] }
 0x10b   :  { %854 = vmatpush.msra.mxu2 %v2125_v15  ;;  %874 = vmatpush.msra.mxu3 %v2123_v14  ;;  %v3103_v14 = vld [vmem:[#allocation29_spill] sm:$0xff]  ;;  %v3104_v15 = vld [vmem:[#allocation31_spill] sm:$0xff] }
 0x10c   :  { %815 = vmatpush.msra.mxu0 %v2129_v16  ;;  %835 = vmatpush.msra.mxu1 %v2131_v17  ;;  %v3105_v16 = vld [vmem:[#allocation30_spill] sm:$0xff]  ;;  %v3106_v17 = vld [vmem:[#allocation32_spill] sm:$0xff] }
 0x10d   :  { %855 = vmatpush.msra.mxu2 %v2137_v19  ;;  %875 = vmatpush.msra.mxu3 %v2135_v18 }
 0x10e   :  { %816 = vmatpush.msra.mxu0 %v2141_v20  ;;  %836 = vmatpush.msra.mxu1 %v2143_v21 }
 0x10f   :  { %856 = vmatpush.msra.mxu2 %v2149_v23  ;;  %876 = vmatpush.msra.mxu3 %v2147_v22 }
 0x110   :  { %817 = vmatpush.msra.mxu0 %v2153_v24  ;;  %837 = vmatpush.msra.mxu1 %v2155_v25 }
 0x111   :  { %857 = vmatpush.msra.mxu2 %v2161_v27  ;;  %877 = vmatpush.msra.mxu3 %v2159_v26 }
 0x112   :  { %818 = vmatpush.msra.mxu0 %v2165_v28  ;;  %838 = vmatpush.msra.mxu1 %v2167_v29 }
 0x113   :  { %858 = vmatpush.msra.mxu2 %v2177_v32  ;;  %878 = vmatpush.msra.mxu3 %v2171_v30 }
 0x114   :  { %819 = vmatpush.msra.mxu0 %v2179_v33  ;;  %839 = vmatpush.msra.mxu1 %v2182_v34 }
 0x115   :  { %859 = vmatpush.msra.mxu2 %v2186_v36  ;;  %879 = vmatpush.msra.mxu3 %v2184_v35 }
 0x116   :  { %820 = vmatpush.msra.mxu0 %v2190_v37  ;;  %840 = vmatpush.msra.mxu1 %v2192_v38 }
 0x117   :  { %860 = vmatpush.msra.mxu2 %v2197_v40  ;;  %880 = vmatpush.msra.mxu3 %v3089_v0 }
 0x118   :  { %821 = vmatpush.msra.mxu0 %v3090_v1  ;;  %841 = vmatpush.msra.mxu1 %v3091_v2 }
 0x119   :  { %861 = vmatpush.msra.mxu2 %v3092_v3  ;;  %881 = vmatpush.msra.mxu3 %v3093_v4 }
 0x11a   :  { %822 = vmatpush.msra.mxu0 %v3094_v5  ;;  %842 = vmatpush.msra.mxu1 %v3095_v6 }
 0x11b   :  { %862 = vmatpush.msra.mxu2 %v3096_v7  ;;  %882 = vmatpush.msra.mxu3 %v3097_v8 }
 0x11c   :  { %823 = vmatpush.msra.mxu0 %v3098_v9  ;;  %843 = vmatpush.msra.mxu1 %v3099_v10 }
 0x11d   :  { %863 = vmatpush.msra.mxu2 %v3100_v11  ;;  %883 = vmatpush.msra.mxu3 %v3101_v12 }
 0x11e   :  { %824 = vmatpush.msra.mxu0 %v3102_v13  ;;  %844 = vmatpush.msra.mxu1 %v3103_v14 }
 0x11f   :  { %864 = vmatpush.msra.mxu2 %v3104_v15  ;;  %884 = vmatpush.msra.mxu3 %v3105_v16 }
 0x120   :  { %825 = vmatpush.msra.mxu0 %v3106_v17  ;;  %845 = vmatpush.msra.mxu1 %v3107_v39 }
 0x121   :  { %865 = vmatpush.msra.mxu2 %v3108_v41  ;;  %885 = vmatpush.msra.mxu3 %v3109_v42 }
 0x122   :  { %826 = vmatpush.msra.mxu0 %v3110_v61  ;;  %846 = vmatpush.msra.mxu1 %v3111_v57 }
 0x123   :  { %866 = vmatpush.msra.mxu2 %v3112_v58  ;;  %886 = vmatpush.msra.mxu3 %v3113_v63 }
 0x17f   :  { %v480_v43 = vpop.f32.mrf.mxu0  ;;  %v500_v59 = vpop.f32.mrf.mxu1 }
 0x180   :  { %v547_v56 = vrot.slane %v480_v43, 6  ;;  %v548_v47 = vrot.slane %v500_v59, 6 }
 0x182   :  { %v555_v50 = vadd.f32 %v547_v56, %v3114_v60  ;;  %v556_v53 = vadd.f32 %v548_v47, %v3115_v52 }
 0x184   :  { %v1684_v46 = vmul.f32 -1.442695, %v555_v50  ;;  %v1685_v54 = vmul.f32 -1.442695, %v556_v53  ;;  %v3117_v53 = vld [vmem:[#allocation47_spill] sm:$0xff] }
 0x186   :  { %1731 = vpow2.f32 %v1684_v46  ;;  %v540_v49 = vpop.f32.mrf.mxu3  ;;  %v520_v43 = vpop.f32.mrf.mxu2 }
 0x187   :  { %1733 = vpow2.f32 %v1685_v54  ;;  %v550_v51 = vrot.slane %v540_v49, 6  ;;  %v549_v59 = vrot.slane %v520_v43, 6 }
 0x189   :  { %v558_v45 = vadd.f32 %v550_v51, %v3116_v55  ;;  %v557_v46 = vadd.f32 %v549_v59, %v3117_v53 }
 0x18b   :  { %v1686_v62 = vmul.f32 -1.442695, %v558_v45 }
 0x18c   :  { %v1732_v44 = vpop.eup %1731 }
 0x18d   :  { %v1734_v48 = vpop.eup %1733  ;;  %v562_v63 = vadd.f32 1.0, %v1732_v44  ;;  %1735 = vpow2.f32 %v1686_v62 }
 0x18e   :  { %v581_v58 = vadd.f32 1.0, %v1734_v48 }
 0x18f   :  { %1737 = vrcp.f32 %v562_v63  ;;  %v574_v55 = vand.u32 2147483648, %v562_v63  ;;  %v572_v48 = vand.u32 2147483647, %v562_v63  ;;  %vm568_vm14 = vweird.f32 %v562_v63 }
 0x190   :  { %1739 = vrcp.f32 %v581_v58  ;;  %v593_v44 = vand.u32 2147483648, %v581_v58  ;;  %v591_v43 = vand.u32 2147483647, %v581_v58  ;;  %vm587_vm15 = vweird.f32 %v581_v58 }
 0x191   :  { %v575_v59 = vor.u32 1.1754944e-38, %v574_v55  ;;  %vm573_vm2 = vcmp.eq.f32.partialorder %v572_v48, 8.507059e+37  ;;  %v2515_v48 = vld [vmem:[#allocation7 + $0x1c8] sm:$0xff] }
 0x192   :  { %vm592_vm3 = vcmp.eq.f32.partialorder %v591_v43, 8.507059e+37 }
 0x193   :  { %v1736_v56 = vpop.eup %1735 }
 0x194   :  { %v601_v47 = vadd.f32 1.0, %v1736_v56 }
 0x195   :  { %v1738_v50 = vpop.eup %1737 }
 0x196   :  { %v1740_v52 = vpop.eup %1739  ;;  %v564_v54 = vmul.f32 %v1738_v50, %v562_v63  ;;  %1741 = vrcp.f32 %v601_v47  ;;  %vm569_vm12 = vweird.f32 %v1738_v50  ;;  %vm607_vm5 = vweird.f32 %v601_v47 }
 0x197   :  { %v583_v49 = vmul.f32 %v1740_v52, %v581_v58  ;;  %1743 = vtanh.f32 %v557_v46  ;;  %vm588_vm13 = vweird.f32 %v1740_v52  ;;  %vm570_vm0 = vmor %vm568_vm14, %vm569_vm12 }
 0x198   :  { %v565_v51 = vsub.f32 1.0, %v564_v54  ;;  %v618_v54 = vrot.slane %v2425_v31, 6  ;;  %vm589_vm1 = vmor %vm587_vm15, %vm588_vm13  ;;  %v613_v31 = vand.u32 2147483648, %v601_v47 }
 0x199   :  { %v584_v45 = vsub.f32 1.0, %v583_v49  ;;  %v594_v49 = vor.u32 1.1754944e-38, %v593_v44 }
 0x19a   :  { %v566_v62 = vmul.f32 %v1738_v50, %v565_v51  ;;  %v614_v44 = vor.u32 1.1754944e-38, %v613_v31  ;;  %v2545_v31 = vld [vmem:[#allocation7 + $0x198] sm:$0xff] }
 0x19b   :  { %v585_v60 = vmul.f32 %v1740_v52, %v584_v45 }
 0x19c   :  { %v1742_v57 = vpop.eup %1741  ;;  %v567_v56 = vadd.f32 %v1738_v50, %v566_v62 }
 0x19d   :  { %v586_v53 = vadd.f32 %v1740_v52, %v585_v60  ;;  %v603_v61 = vmul.f32 %v1742_v57, %v601_v47  ;;  %v1744_v51 = vpop.eup %1743  ;;  %vm608_vm4 = vweird.f32 %v1742_v57  ;;  %v611_v60 = vand.u32 2147483647, %v601_v47  ;;  %v2512_v47 = vld [vmem:[#allocation7 + $0x1c0] sm:$0xff] }
 0x19e   :  { %v571_v46 = vsel %vm570_vm0, %v1738_v50, %v567_v56  ;;  %vm609_vm6 = vmor %vm607_vm5, %vm608_vm4 }
 0x19f   :  { %v576_v42 = vsel %vm573_vm2, %v575_v59, %v571_v46  ;;  %v590_v41 = vsel %vm589_vm1, %v1740_v52, %v586_v53  ;;  %v604_v45 = vsub.f32 1.0, %v603_v61  ;;  %vm612_vm7 = vcmp.eq.f32.partialorder %v611_v60, 8.507059e+37  ;;  %v2518_v59 = vld [vmem:[#allocation7 + $0x1d0] sm:$0xff]  ;;  %v2527_v46 = vld [vmem:[#allocation7 + $0x1a8] sm:$0xff]  ;;  %v2548_v60 = vld [vmem:[#allocation7 + $0x160] sm:$0xff] }
 0x1a0   :  { %v595_v39 = vsel %vm592_vm3, %v594_v49, %v590_v41  ;;  %v621_v17 = vmul.f32 %v1744_v51, %v576_v42  ;;  %v2506_v42 = vld [vmem:[#allocation7 + $0x1f0] sm:$0xff]  ;;  %v2524_v49 = vld [vmem:[#allocation7 + $0x1a0] sm:$0xff] }
 0x1a1   :  { %v620_v62 = vmul.f32 %v618_v54, %v595_v39  ;;  %v605_v63 = vmul.f32 %v1742_v57, %v604_v45  ;;  %v2503_v39 = vld [vmem:[#allocation7 + $0x1e8] sm:$0xff]  ;;  %v2521_v54 = vld [vmem:[#allocation7 + $0x1d8] sm:$0xff]  ;;  %v2530_v51 = vld [vmem:[#allocation7 + $0x1b0] sm:$0xff] }
 0x1a2   :  { %v2533_v45 = vld [vmem:[#allocation7 + $0x1b8] sm:$0xff] }
 0x1a3   :  { %v2497_v58 = vadd.f32 %v621_v17, %v620_v62  ;;  %v606_v55 = vadd.f32 %v1742_v57, %v605_v63  ;;  %v2500_v17 = vld [vmem:[#allocation7 + $0x1e0] sm:$0xff]  ;;  %v2539_v63 = vld [vmem:[#allocation7 + $0x188] sm:$0xff] }
 0x1a4   :  { %v2536_v62 = vld [vmem:[#allocation7 + $0x180] sm:$0xff] }
 0x1a5   :  { %1745 = vtanh.f32 %v2497_v58  ;;  %v610_v50 = vsel %vm609_vm6, %v1742_v57, %v606_v55  ;;  %v2509_v57 = vld [vmem:[#allocation7 + $0x1f8] sm:$0xff]  ;;  %v2542_v55 = vld [vmem:[#allocation7 + $0x190] sm:$0xff] }
 0x1a6   :  { %v615_v53 = vsel %vm612_vm7, %v614_v44, %v610_v50  ;;  %v2551_v50 = vld [vmem:[#allocation7 + $0x168] sm:$0xff] }
 0x1ab   :  { %v1746_v52 = vpop.eup %1745 }
 0x1ac   :  { %v624_v61 = vmul.f32 %v1746_v52, %v615_v53 }
 0x1ae   :  { %626 = vst [vmem:[#allocation1] sm:$0xff] %v624_v61  ;;  %v635_v41 = vrot.slane %v624_v61, 2 }
 0x1b0   :  { %653 = vmatmul.f32.vlgmr.msrb.gmra.mxu0 %v635_v41  ;;  %673 = vmatmul.f32.vlgmr.msrb.gmra.mxu1 %v635_v41 }
 0x1b1   :  { %693 = vmatmul.f32.vlgmr.msrb.gmra.mxu2 %v635_v41  ;;  %713 = vmatmul.f32.vlgmr.msrb.gmra.mxu3 %v635_v41 }
 0x1b2   :  { %985 = vmatpush.msrb.mxu0 %v2500_v17  ;;  %1005 = vmatpush.msrb.mxu1 %v2503_v39 }
 0x1b3   :  { %1025 = vmatpush.msrb.mxu2 %v2506_v42  ;;  %1045 = vmatpush.msrb.mxu3 %v2509_v57 }
 0x1b4   :  { %986 = vmatpush.msrb.mxu0 %v2512_v47  ;;  %1006 = vmatpush.msrb.mxu1 %v2515_v48 }
 0x1b5   :  { %v628_v43 = vld [vmem:[#allocation1 + $0x2] ss:$9 sm:$0xff]  ;;  %1026 = vmatpush.msrb.mxu2 %v2518_v59  ;;  %1046 = vmatpush.msrb.mxu3 %v2521_v54 }
 0x1b6   :  { %v630_v56 = vld [vmem:[#allocation1 + $0x3] ss:$9 sm:$0xff]  ;;  %633 = vst [vmem:[#allocation10 + $0x1] sm:$0x1] %v628_v43  ;;  %987 = vmatpush.msrb.mxu0 %v2524_v49  ;;  %1007 = vmatpush.msrb.mxu1 %v2527_v46 }
 0x1b7   :  { %634 = vst [vmem:[#allocation10 + $0x9] sm:$0x1] %v630_v56  ;;  %1027 = vmatpush.msrb.mxu2 %v2530_v51  ;;  %1047 = vmatpush.msrb.mxu3 %v2533_v45 }
 0x1b8   :  { %988 = vmatpush.msrb.mxu0 %v2536_v62  ;;  %1008 = vmatpush.msrb.mxu1 %v2539_v63 }
 0x1b9   :  { %1028 = vmatpush.msrb.mxu2 %v2542_v55  ;;  %1048 = vmatpush.msrb.mxu3 %v2545_v31 }
 0x1ba   :  { %989 = vmatpush.msrb.mxu0 %v2548_v60  ;;  %1009 = vmatpush.msrb.mxu1 %v2551_v50 }
 0x1bb   :  { %1029 = vmatpush.msrb.mxu2 %v2137_v19  ;;  %1049 = vmatpush.msrb.mxu3 %v2135_v18  ;;  %v3118_v18 = vld [vmem:[#allocation32_spill] sm:$0xff]  ;;  %v3119_v19 = vld [vmem:[#allocation33_spill] sm:$0xff] }
 0x1bc   :  { %990 = vmatpush.msrb.mxu0 %v2141_v20  ;;  %1010 = vmatpush.msrb.mxu1 %v2143_v21  ;;  %v3120_v20 = vld [vmem:[#allocation35_spill] sm:$0xff]  ;;  %v3121_v21 = vld [vmem:[#allocation34_spill] sm:$0xff] }
 0x1bd   :  { %1030 = vmatpush.msrb.mxu2 %v2149_v23  ;;  %1050 = vmatpush.msrb.mxu3 %v2147_v22  ;;  %v3122_v22 = vld [vmem:[#allocation36_spill] sm:$0xff]  ;;  %v3123_v23 = vld [vmem:[#allocation37_spill] sm:$0xff] }
 0x1be   :  { %991 = vmatpush.msrb.mxu0 %v2153_v24  ;;  %1011 = vmatpush.msrb.mxu1 %v2155_v25  ;;  %v3124_v24 = vld [vmem:[#allocation39_spill] sm:$0xff]  ;;  %v3125_v25 = vld [vmem:[#allocation38_spill] sm:$0xff] }
 0x1bf   :  { %1031 = vmatpush.msrb.mxu2 %v2161_v27  ;;  %1051 = vmatpush.msrb.mxu3 %v2159_v26 }
 0x1c0   :  { %992 = vmatpush.msrb.mxu0 %v2165_v28  ;;  %1012 = vmatpush.msrb.mxu1 %v2167_v29 }
 0x1c1   :  { %1032 = vmatpush.msrb.mxu2 %v2177_v32  ;;  %1052 = vmatpush.msrb.mxu3 %v2171_v30  ;;  %v3126_v30 = vld [vmem:[#allocation43_spill] sm:$0xff] }
 0x1c2   :  { %993 = vmatpush.msrb.mxu0 %v2179_v33  ;;  %1013 = vmatpush.msrb.mxu1 %v2182_v34  ;;  %v3127_v33 = vld [vmem:[#allocation44_spill] sm:$0xff] }
 0x1c3   :  { %1033 = vmatpush.msrb.mxu2 %v2186_v36  ;;  %1053 = vmatpush.msrb.mxu3 %v2184_v35 }
 0x1c4   :  { %994 = vmatpush.msrb.mxu0 %v2190_v37  ;;  %1014 = vmatpush.msrb.mxu1 %v2192_v38 }
 0x1c5   :  { %1034 = vmatpush.msrb.mxu2 %v2197_v40  ;;  %1054 = vmatpush.msrb.mxu3 %v3089_v0  ;;  %v3128_v40 = vld [vmem:[#allocation46_spill] sm:$0xff] }
 0x1c6   :  { %995 = vmatpush.msrb.mxu0 %v3090_v1  ;;  %1015 = vmatpush.msrb.mxu1 %v3091_v2 }
 0x1c7   :  { %1035 = vmatpush.msrb.mxu2 %v3092_v3  ;;  %1055 = vmatpush.msrb.mxu3 %v3093_v4 }
 0x1c8   :  { %996 = vmatpush.msrb.mxu0 %v3094_v5  ;;  %1016 = vmatpush.msrb.mxu1 %v3095_v6 }
 0x1c9   :  { %1036 = vmatpush.msrb.mxu2 %v3096_v7  ;;  %1056 = vmatpush.msrb.mxu3 %v3097_v8 }
 0x1ca   :  { %997 = vmatpush.msrb.mxu0 %v3098_v9  ;;  %1017 = vmatpush.msrb.mxu1 %v3099_v10 }
 0x1cb   :  { %1037 = vmatpush.msrb.mxu2 %v3100_v11  ;;  %1057 = vmatpush.msrb.mxu3 %v3101_v12  ;;  %v3129_v11 = vld [vmem:[#allocation47_spill] sm:$0xff] }
 0x1cc   :  { %998 = vmatpush.msrb.mxu0 %v3102_v13  ;;  %1018 = vmatpush.msrb.mxu1 %v3103_v14 }
 0x1cd   :  { %1038 = vmatpush.msrb.mxu2 %v3104_v15  ;;  %1058 = vmatpush.msrb.mxu3 %v3105_v16 }
 0x1ce   :  { %999 = vmatpush.msrb.mxu0 %v3118_v18  ;;  %1019 = vmatpush.msrb.mxu1 %v3119_v19 }
 0x1cf   :  { %1039 = vmatpush.msrb.mxu2 %v3120_v20  ;;  %1059 = vmatpush.msrb.mxu3 %v3121_v21 }
 0x1d0   :  { %1000 = vmatpush.msrb.mxu0 %v3122_v22  ;;  %1020 = vmatpush.msrb.mxu1 %v3123_v23  ;;  %v792_v23 = vrot.slane %v2497_v58, 6 }
 0x1d1   :  { %1040 = vmatpush.msrb.mxu2 %v3124_v24  ;;  %1060 = vmatpush.msrb.mxu3 %v3125_v25 }
 0x22d   :  { %v654_v26 = vpop.f32.mrf.mxu0  ;;  %v674_v27 = vpop.f32.mrf.mxu1 }
 0x22e   :  { %v721_v28 = vrot.slane %v654_v26, 4  ;;  %v722_v29 = vrot.slane %v674_v27, 4 }
 0x230   :  { %v729_v32 = vadd.f32 %v721_v28, %v3126_v30  ;;  %v730_v34 = vadd.f32 %v722_v29, %v3127_v33 }
 0x232   :  { %v1687_v35 = vmul.f32 -1.442695, %v729_v32  ;;  %v1688_v36 = vmul.f32 -1.442695, %v730_v34 }
 0x234   :  { %1747 = vpow2.f32 %v1687_v35  ;;  %v714_v37 = vpop.f32.mrf.mxu3  ;;  %v694_v6 = vpop.f32.mrf.mxu2 }
 0x235   :  { %1749 = vpow2.f32 %v1688_v36  ;;  %v724_v38 = vrot.slane %v714_v37, 4  ;;  %v723_v7 = vrot.slane %v694_v6, 4 }
 0x237   :  { %v732_v0 = vadd.f32 %v724_v38, %v3128_v40  ;;  %v731_v12 = vadd.f32 %v723_v7, %v3129_v11 }
 0x239   :  { %v1689_v1 = vmul.f32 -1.442695, %v732_v0 }
 0x23a   :  { %v1748_v2 = vpop.eup %1747 }
 0x23b   :  { %v1750_v3 = vpop.eup %1749  ;;  %v736_v4 = vadd.f32 1.0, %v1748_v2  ;;  %1751 = vpow2.f32 %v1689_v1 }
 0x23c   :  { %v755_v5 = vadd.f32 1.0, %v1750_v3 }
 0x23d   :  { %1753 = vrcp.f32 %v736_v4  ;;  %v748_v52 = vand.u32 2147483648, %v736_v4  ;;  %v746_v41 = vand.u32 2147483647, %v736_v4  ;;  %vm742_vm10 = vweird.f32 %v736_v4 }
 0x23e   :  { %1755 = vrcp.f32 %v755_v5  ;;  %v767_v53 = vand.u32 2147483648, %v755_v5  ;;  %v765_v56 = vand.u32 2147483647, %v755_v5  ;;  %vm761_vm11 = vweird.f32 %v755_v5 }
 0x23f   :  { %v749_v20 = vor.u32 1.1754944e-38, %v748_v52  ;;  %vm747_vm14 = vcmp.eq.f32.partialorder %v746_v41, 8.507059e+37  ;;  %v2650_v52 = vld [vmem:[#allocation7 + $0x130] sm:$0xff]  ;;  %v2659_v41 = vld [vmem:[#allocation7 + $0x108] sm:$0xff] }
 0x240   :  { %v768_v24 = vor.u32 1.1754944e-38, %v767_v53  ;;  %vm766_vm15 = vcmp.eq.f32.partialorder %v765_v56, 8.507059e+37  ;;  %v2653_v53 = vld [vmem:[#allocation7 + $0x138] sm:$0xff] }
 0x241   :  { %v1752_v8 = vpop.eup %1751  ;;  %v2665_v56 = vld [vmem:[#allocation7 + $0x118] sm:$0xff] }
 0x242   :  { %v775_v9 = vadd.f32 1.0, %v1752_v8 }
 0x243   :  { %v1754_v10 = vpop.eup %1753 }
 0x244   :  { %v1756_v13 = vpop.eup %1755  ;;  %v738_v14 = vmul.f32 %v1754_v10, %v736_v4  ;;  %1757 = vrcp.f32 %v775_v9  ;;  %vm743_vm8 = vweird.f32 %v1754_v10  ;;  %v787_v58 = vand.u32 2147483648, %v775_v9 }
 0x245   :  { %v757_v15 = vmul.f32 %v1756_v13, %v755_v5  ;;  %1759 = vtanh.f32 %v731_v12  ;;  %vm762_vm9 = vweird.f32 %v1756_v13  ;;  %vm744_vm12 = vmor %vm742_vm10, %vm743_vm8  ;;  %vm781_vm1 = vweird.f32 %v775_v9  ;;  %v2632_v12 = vld [vmem:[#allocation7 + $0x140] sm:$0xff] }
 0x246   :  { %v739_v16 = vsub.f32 1.0, %v738_v14  ;;  %vm763_vm13 = vmor %vm761_vm11, %vm762_vm9  ;;  %v785_v0 = vand.u32 2147483647, %v775_v9  ;;  %v788_v2 = vor.u32 1.1754944e-38, %v787_v58  ;;  %v2638_v14 = vld [vmem:[#allocation7 + $0x150] sm:$0xff]  ;;  %v2719_v58 = vld [vmem:[#allocation7 + $0x68] sm:$0xff] }
 0x247   :  { %v758_v44 = vsub.f32 1.0, %v757_v15  ;;  %v2641_v15 = vld [vmem:[#allocation7 + $0x158] sm:$0xff]  ;;  %3141 = vst [vmem:[#allocation27_spill] sm:$0xff] %v2719_v58 }
 0x248   :  { %v740_v61 = vmul.f32 %v1754_v10, %v739_v16  ;;  %vm786_vm3 = vcmp.eq.f32.partialorder %v785_v0, 8.507059e+37  ;;  %v2644_v16 = vld [vmem:[#allocation7 + $0x120] sm:$0xff]  ;;  %v2722_v0 = vld [vmem:[#allocation7 + $0x70] sm:$0xff] }
 0x249   :  { %v759_v43 = vmul.f32 %v1756_v13, %v758_v44  ;;  %v2647_v44 = vld [vmem:[#allocation7 + $0x128] sm:$0xff]  ;;  %3142 = vst [vmem:[#allocation26_spill] sm:$0xff] %v2722_v0 }
 0x24a   :  { %v1758_v18 = vpop.eup %1757  ;;  %v741_v19 = vadd.f32 %v1754_v10, %v740_v61  ;;  %v2656_v61 = vld [vmem:[#allocation7 + $0x100] sm:$0xff] }
 0x24b   :  { %v760_v21 = vadd.f32 %v1756_v13, %v759_v43  ;;  %v777_v22 = vmul.f32 %v1758_v18, %v775_v9  ;;  %v1760_v26 = vpop.eup %1759  ;;  %vm782_vm0 = vweird.f32 %v1758_v18  ;;  %v2626_v9 = vld [vmem:[#allocation7 + $0x170] sm:$0xff] }
 0x24c   :  { %v745_v25 = vsel %vm744_vm12, %v1754_v10, %v741_v19  ;;  %vm783_vm2 = vmor %vm781_vm1, %vm782_vm0  ;;  %v2629_v10 = vld [vmem:[#allocation7 + $0x178] sm:$0xff]  ;;  %v2662_v43 = vld [vmem:[#allocation7 + $0x110] sm:$0xff] }
 0x24d   :  { %v750_v27 = vsel %vm747_vm14, %v749_v20, %v745_v25  ;;  %v764_v28 = vsel %vm763_vm13, %v1756_v13, %v760_v21  ;;  %v778_v29 = vsub.f32 1.0, %v777_v22  ;;  %v2635_v13 = vld [vmem:[#allocation7 + $0x148] sm:$0xff]  ;;  %v2674_v20 = vld [vmem:[#allocation7 + $0xf0] sm:$0xff]  ;;  %v2677_v21 = vld [vmem:[#allocation7 + $0xf8] sm:$0xff] }
 0x24e   :  { %v769_v32 = vsel %vm766_vm15, %v768_v24, %v764_v28  ;;  %v795_v34 = vmul.f32 %v1760_v26, %v750_v27  ;;  %v2671_v19 = vld [vmem:[#allocation7 + $0xe8] sm:$0xff]  ;;  %v2680_v22 = vld [vmem:[#allocation7 + $0xc0] sm:$0xff]  ;;  %v2686_v24 = vld [vmem:[#allocation7 + $0xd0] sm:$0xff] }
 0x24f   :  { %v794_v35 = vmul.f32 %v792_v23, %v769_v32  ;;  %v779_v36 = vmul.f32 %v1758_v18, %v778_v29  ;;  %v2683_v23 = vld [vmem:[#allocation7 + $0xc8] sm:$0xff]  ;;  %3130 = vst [vmem:[#allocation15_spill] sm:$0xff] %v2686_v24  ;;  %v2689_v25 = vld [vmem:[#allocation7 + $0xd8] sm:$0xff]  ;;  %v2692_v26 = vld [vmem:[#allocation7 + $0xa0] sm:$0xff] }
 0x250   :  { %3131 = vst [vmem:[#allocation16_spill] sm:$0xff] %v2689_v25  ;;  %v2695_v27 = vld [vmem:[#allocation7 + $0xa8] sm:$0xff]  ;;  %v2698_v28 = vld [vmem:[#allocation7 + $0xb0] sm:$0xff]  ;;  %v2701_v29 = vld [vmem:[#allocation7 + $0xb8] sm:$0xff] }
 0x251   :  { %v2605_v37 = vadd.f32 %v795_v34, %v794_v35  ;;  %v780_v38 = vadd.f32 %v1758_v18, %v779_v36  ;;  %3132 = vst [vmem:[#allocation17_spill] sm:$0xff] %v2692_v26  ;;  %v2704_v32 = vld [vmem:[#allocation7 + $0x80] sm:$0xff]  ;;  %v2707_v34 = vld [vmem:[#allocation7 + $0x88] sm:$0xff]  ;;  %v2710_v35 = vld [vmem:[#allocation7 + $0x90] sm:$0xff] }
 0x252   :  { %3133 = vst [vmem:[#allocation19_spill] sm:$0xff] %v2695_v27  ;;  %v2713_v36 = vld [vmem:[#allocation7 + $0x98] sm:$0xff] }
 0x253   :  { %1761 = vtanh.f32 %v2605_v37  ;;  %v784_v1 = vsel %vm783_vm2, %v1758_v18, %v780_v38  ;;  %v2668_v18 = vld [vmem:[#allocation7 + $0xe0] sm:$0xff]  ;;  %3134 = vst [vmem:[#allocation18_spill] sm:$0xff] %v2698_v28 }
 0x254   :  { %v789_v4 = vsel %vm786_vm3, %v788_v2, %v784_v1  ;;  %3135 = vst [vmem:[#allocation20_spill] sm:$0xff] %v2701_v29  ;;  %v2716_v38 = vld [vmem:[#allocation7 + $0x60] sm:$0xff]  ;;  %v2725_v1 = vld [vmem:[#allocation7 + $0x78] sm:$0xff] }
 0x255   :  { %3136 = vst [vmem:[#allocation21_spill] sm:$0xff] %v2704_v32  ;;  %v2728_v2 = vld [vmem:[#allocation7 + $0x40] sm:$0xff] }
 0x256   :  { %3137 = vst [vmem:[#allocation23_spill] sm:$0xff] %v2707_v34 }
 0x257   :  { %3138 = vst [vmem:[#allocation22_spill] sm:$0xff] %v2710_v35 }
 0x258   :  { %3139 = vst [vmem:[#allocation24_spill] sm:$0xff] %v2713_v36 }
 0x259   :  { %v1762_v3 = vpop.eup %1761  ;;  %3140 = vst [vmem:[#allocation25_spill] sm:$0xff] %v2716_v38 }
 0x25a   :  { %v798_v5 = vmul.f32 %v1762_v3, %v789_v4  ;;  %3143 = vst [vmem:[#allocation28_spill] sm:$0xff] %v2725_v1  ;;  %v2731_v3 = vld [vmem:[#allocation7 + $0x48] sm:$0xff]  ;;  %v2734_v4 = vld [vmem:[#allocation7 + $0x50] sm:$0xff] }
 0x25b   :  { %3144 = vst [vmem:[#allocation29_spill] sm:$0xff] %v2728_v2 }
 0x25c   :  { %800 = vst [vmem:[#allocation1] sm:$0xff] %v798_v5  ;;  %v809_v6 = vrot.slane %v798_v5, 4  ;;  %v2737_v5 = vld [vmem:[#allocation7 + $0x58] sm:$0xff] }
 0x25d   :  { %3145 = vst [vmem:[#allocation31_spill] sm:$0xff] %v2731_v3 }
 0x25e   :  { %827 = vmatmul.f32.vlgmr.msra.gmra.mxu0 %v809_v6  ;;  %847 = vmatmul.f32.vlgmr.msra.gmra.mxu1 %v809_v6  ;;  %3146 = vst [vmem:[#allocation30_spill] sm:$0xff] %v2734_v4 }
 0x25f   :  { %867 = vmatmul.f32.vlgmr.msra.gmra.mxu2 %v809_v6  ;;  %887 = vmatmul.f32.vlgmr.msra.gmra.mxu3 %v809_v6  ;;  %3147 = vst [vmem:[#allocation32_spill] sm:$0xff] %v2737_v5  ;;  %v2740_v6 = vld [vmem:[#allocation7 + $0x20] sm:$0xff] }
 0x260   :  { %1140 = vmatpush.msra.mxu0 %v2500_v17  ;;  %1160 = vmatpush.msra.mxu1 %v2503_v39  ;;  %3148 = vst [vmem:[#allocation33_spill] sm:$0xff] %v2740_v6 }
 0x261   :  { %1180 = vmatpush.msra.mxu2 %v2506_v42  ;;  %1200 = vmatpush.msra.mxu3 %v2509_v57 }
 0x262   :  { %1141 = vmatpush.msra.mxu0 %v2512_v47  ;;  %1161 = vmatpush.msra.mxu1 %v2515_v48 }
 0x263   :  { %v802_v7 = vld [vmem:[#allocation1 + $0x4] ss:$9 sm:$0xff]  ;;  %1181 = vmatpush.msra.mxu2 %v2518_v59  ;;  %1201 = vmatpush.msra.mxu3 %v2521_v54 }
 0x264   :  { %v804_v8 = vld [vmem:[#allocation1 + $0x5] ss:$9 sm:$0xff]  ;;  %807 = vst [vmem:[#allocation10 + $0x2] sm:$0x1] %v802_v7  ;;  %1142 = vmatpush.msra.mxu0 %v2524_v49  ;;  %1162 = vmatpush.msra.mxu1 %v2527_v46 }
 0x265   :  { %808 = vst [vmem:[#allocation10 + $0xa] sm:$0x1] %v804_v8  ;;  %1182 = vmatpush.msra.mxu2 %v2530_v51  ;;  %1202 = vmatpush.msra.mxu3 %v2533_v45  ;;  %v2743_v7 = vld [vmem:[#allocation7 + $0x28] sm:$0xff]  ;;  %v2746_v8 = vld [vmem:[#allocation7 + $0x30] sm:$0xff] }
 0x266   :  { %1143 = vmatpush.msra.mxu0 %v2536_v62  ;;  %1163 = vmatpush.msra.mxu1 %v2539_v63  ;;  %3149 = vst [vmem:[#allocation35_spill] sm:$0xff] %v2743_v7 }
 0x267   :  { %1183 = vmatpush.msra.mxu2 %v2542_v55  ;;  %1203 = vmatpush.msra.mxu3 %v2545_v31  ;;  %3150 = vst [vmem:[#allocation34_spill] sm:$0xff] %v2746_v8 }
 0x268   :  { %1144 = vmatpush.msra.mxu0 %v2548_v60  ;;  %1164 = vmatpush.msra.mxu1 %v2551_v50 }
 0x269   :  { %1184 = vmatpush.msra.mxu2 %v2626_v9  ;;  %1204 = vmatpush.msra.mxu3 %v2629_v10 }
 0x26a   :  { %1145 = vmatpush.msra.mxu0 %v2632_v12  ;;  %1165 = vmatpush.msra.mxu1 %v2635_v13 }
 0x26b   :  { %1185 = vmatpush.msra.mxu2 %v2638_v14  ;;  %1205 = vmatpush.msra.mxu3 %v2641_v15 }
 0x26c   :  { %1146 = vmatpush.msra.mxu0 %v2644_v16  ;;  %1166 = vmatpush.msra.mxu1 %v2647_v44 }
 0x26d   :  { %1186 = vmatpush.msra.mxu2 %v2650_v52  ;;  %1206 = vmatpush.msra.mxu3 %v2653_v53 }
 0x26e   :  { %1147 = vmatpush.msra.mxu0 %v2656_v61  ;;  %1167 = vmatpush.msra.mxu1 %v2659_v41 }
 0x26f   :  { %1187 = vmatpush.msra.mxu2 %v2662_v43  ;;  %1207 = vmatpush.msra.mxu3 %v2665_v56 }
 0x270   :  { %1148 = vmatpush.msra.mxu0 %v2668_v18  ;;  %1168 = vmatpush.msra.mxu1 %v2671_v19 }
 0x271   :  { %1188 = vmatpush.msra.mxu2 %v2674_v20  ;;  %1208 = vmatpush.msra.mxu3 %v2677_v21 }
 0x272   :  { %1149 = vmatpush.msra.mxu0 %v2680_v22  ;;  %1169 = vmatpush.msra.mxu1 %v2683_v23 }
 0x273   :  { %1189 = vmatpush.msra.mxu2 %v2686_v24  ;;  %1209 = vmatpush.msra.mxu3 %v2689_v25 }
 0x274   :  { %1150 = vmatpush.msra.mxu0 %v2692_v26  ;;  %1170 = vmatpush.msra.mxu1 %v2695_v27 }
 0x275   :  { %1190 = vmatpush.msra.mxu2 %v2698_v28  ;;  %1210 = vmatpush.msra.mxu3 %v2701_v29 }
 0x276   :  { %1151 = vmatpush.msra.mxu0 %v2704_v32  ;;  %1171 = vmatpush.msra.mxu1 %v2707_v34 }
 0x277   :  { %1191 = vmatpush.msra.mxu2 %v2710_v35  ;;  %1211 = vmatpush.msra.mxu3 %v2713_v36 }
 0x278   :  { %1152 = vmatpush.msra.mxu0 %v2716_v38  ;;  %1172 = vmatpush.msra.mxu1 %v2719_v58 }
 0x279   :  { %1192 = vmatpush.msra.mxu2 %v2722_v0  ;;  %1212 = vmatpush.msra.mxu3 %v2725_v1 }
 0x27a   :  { %1153 = vmatpush.msra.mxu0 %v2728_v2  ;;  %1173 = vmatpush.msra.mxu1 %v2731_v3  ;;  %v2749_v3 = vld [vmem:[#allocation7 + $0x38] sm:$0xff] }
 0x27b   :  { %1193 = vmatpush.msra.mxu2 %v2734_v4  ;;  %1213 = vmatpush.msra.mxu3 %v2737_v5  ;;  %3151 = vst [vmem:[#allocation36_spill] sm:$0xff] %v2749_v3  ;;  %v2752_v4 = vld [vmem:[#allocation7] sm:$0xff]  ;;  %v2755_v5 = vld [vmem:[#allocation7 + $0x8] sm:$0xff] }
 0x27c   :  { %1154 = vmatpush.msra.mxu0 %v2740_v6  ;;  %1174 = vmatpush.msra.mxu1 %v2743_v7  ;;  %3152 = vst [vmem:[#allocation37_spill] sm:$0xff] %v2752_v4  ;;  %v2758_v6 = vld [vmem:[#allocation7 + $0x10] sm:$0xff]  ;;  %v2761_v7 = vld [vmem:[#allocation7 + $0x18] sm:$0xff] }
 0x27d   :  { %1194 = vmatpush.msra.mxu2 %v2746_v8  ;;  %1214 = vmatpush.msra.mxu3 %v2749_v3  ;;  %3153 = vst [vmem:[#allocation39_spill] sm:$0xff] %v2755_v5 }
 0x27e   :  { %1155 = vmatpush.msra.mxu0 %v2752_v4  ;;  %1175 = vmatpush.msra.mxu1 %v2755_v5  ;;  %3154 = vst [vmem:[#allocation38_spill] sm:$0xff] %v2758_v6 }
 0x27f   :  { %1195 = vmatpush.msra.mxu2 %v2758_v6  ;;  %3155 = vst [vmem:[#allocation43_spill] sm:$0xff] %v2761_v7  ;;  %1215 = vmatpush.msra.mxu3 %v2761_v7 }
 0x2db   :  { %v828_v8 = vpop.f32.mrf.mxu0  ;;  %v848_v2 = vpop.f32.mrf.mxu1 }
 0x2dc   :  { %v895_v1 = vrot.slane %v828_v8, 2  ;;  %v896_v3 = vrot.slane %v848_v2, 2 }
 0x2de   :  { %v903_v0 = vadd.f32 %v895_v1, %v3126_v30  ;;  %v904_v4 = vadd.f32 %v896_v3, %v3127_v33 }
 0x2e0   :  { %v1690_v58 = vmul.f32 -1.442695, %v903_v0  ;;  %v1691_v38 = vmul.f32 -1.442695, %v904_v4 }
 0x2e2   :  { %1763 = vpow2.f32 %v1690_v58  ;;  %v888_v5 = vpop.f32.mrf.mxu3  ;;  %v868_v8 = vpop.f32.mrf.mxu2 }
 0x2e3   :  { %1765 = vpow2.f32 %v1691_v38  ;;  %v898_v36 = vrot.slane %v888_v5, 2  ;;  %v897_v30 = vrot.slane %v868_v8, 2 }
 0x2e5   :  { %v906_v6 = vadd.f32 %v898_v36, %v3128_v40  ;;  %v905_v58 = vadd.f32 %v897_v30, %v3129_v11 }
 0x2e7   :  { %v1692_v35 = vmul.f32 -1.442695, %v906_v6 }
 0x2e8   :  { %v1764_v34 = vpop.eup %1763 }
 0x2e9   :  { %v1766_v32 = vpop.eup %1765  ;;  %v910_v7 = vadd.f32 1.0, %v1764_v34  ;;  %1767 = vpow2.f32 %v1692_v35 }
 0x2ea   :  { %v929_v29 = vadd.f32 1.0, %v1766_v32 }
 0x2eb   :  { %1769 = vrcp.f32 %v910_v7  ;;  %v922_v4 = vand.u32 2147483648, %v910_v7  ;;  %v920_v32 = vand.u32 2147483647, %v910_v7  ;;  %vm916_vm6 = vweird.f32 %v910_v7 }
 0x2ec   :  { %1771 = vrcp.f32 %v929_v29  ;;  %v941_v34 = vand.u32 2147483648, %v929_v29  ;;  %v939_v6 = vand.u32 2147483647, %v929_v29  ;;  %vm935_vm7 = vweird.f32 %v929_v29 }
 0x2ed   :  { %v923_v11 = vor.u32 1.1754944e-38, %v922_v4  ;;  %vm921_vm10 = vcmp.eq.f32.partialorder %v920_v32, 8.507059e+37 }
 0x2ee   :  { %vm940_vm11 = vcmp.eq.f32.partialorder %v939_v6, 8.507059e+37  ;;  %v3158_v6 = vld [vmem:[#allocation17_spill] sm:$0xff] }
 0x2ef   :  { %v1768_v1 = vpop.eup %1767 }
 0x2f0   :  { %v949_v33 = vadd.f32 1.0, %v1768_v1 }
 0x2f1   :  { %v1770_v0 = vpop.eup %1769 }
 0x2f2   :  { %v1772_v2 = vpop.eup %1771  ;;  %v912_v38 = vmul.f32 %v1770_v0, %v910_v7  ;;  %1773 = vrcp.f32 %v949_v33  ;;  %vm917_vm4 = vweird.f32 %v1770_v0  ;;  %vm955_vm13 = vweird.f32 %v949_v33 }
 0x2f3   :  { %v931_v3 = vmul.f32 %v1772_v2, %v929_v29  ;;  %1775 = vtanh.f32 %v905_v58  ;;  %vm936_vm5 = vweird.f32 %v1772_v2  ;;  %vm918_vm8 = vmor %vm916_vm6, %vm917_vm4 }
 0x2f4   :  { %v913_v40 = vsub.f32 1.0, %v912_v38  ;;  %v966_v38 = vrot.slane %v2605_v37, 6  ;;  %vm937_vm9 = vmor %vm935_vm7, %vm936_vm5  ;;  %v961_v37 = vand.u32 2147483648, %v949_v33 }
 0x2f5   :  { %v932_v36 = vsub.f32 1.0, %v931_v3  ;;  %v942_v3 = vor.u32 1.1754944e-38, %v941_v34  ;;  %v959_v34 = vand.u32 2147483647, %v949_v33 }
 0x2f6   :  { %v914_v35 = vmul.f32 %v1770_v0, %v913_v40  ;;  %v962_v32 = vor.u32 1.1754944e-38, %v961_v37  ;;  %v3171_v37 = vld [vmem:[#allocation31_spill] sm:$0xff] }
 0x2f7   :  { %v933_v5 = vmul.f32 %v1772_v2, %v932_v36  ;;  %vm960_vm15 = vcmp.eq.f32.partialorder %v959_v34, 8.507059e+37  ;;  %v3172_v34 = vld [vmem:[#allocation30_spill] sm:$0xff] }
 0x2f8   :  { %v1774_v8 = vpop.eup %1773  ;;  %v915_v1 = vadd.f32 %v1770_v0, %v914_v35 }
 0x2f9   :  { %v934_v30 = vadd.f32 %v1772_v2, %v933_v5  ;;  %v951_v28 = vmul.f32 %v1774_v8, %v949_v33  ;;  %v1776_v40 = vpop.eup %1775  ;;  %vm956_vm12 = vweird.f32 %v1774_v8  ;;  %v3157_v33 = vld [vmem:[#allocation16_spill] sm:$0xff] }
 0x2fa   :  { %v919_v58 = vsel %vm918_vm8, %v1770_v0, %v915_v1  ;;  %vm957_vm14 = vmor %vm955_vm13, %vm956_vm12  ;;  %v3160_v1 = vld [vmem:[#allocation18_spill] sm:$0xff] }
 0x2fb   :  { %v924_v27 = vsel %vm921_vm10, %v923_v11, %v919_v58  ;;  %v938_v26 = vsel %vm937_vm9, %v1772_v2, %v934_v30  ;;  %v952_v36 = vsub.f32 1.0, %v951_v28  ;;  %v3161_v11 = vld [vmem:[#allocation20_spill] sm:$0xff]  ;;  %v3162_v30 = vld [vmem:[#allocation21_spill] sm:$0xff] }
 0x2fc   :  { %v943_v25 = vsel %vm940_vm11, %v942_v3, %v938_v26  ;;  %v969_v24 = vmul.f32 %v1776_v40, %v924_v27  ;;  %v3156_v27 = vld [vmem:[#allocation15_spill] sm:$0xff]  ;;  %v3164_v3 = vld [vmem:[#allocation22_spill] sm:$0xff]  ;;  %v3165_v58 = vld [vmem:[#allocation24_spill] sm:$0xff] }
 0x2fd   :  { %v968_v35 = vmul.f32 %v966_v38, %v943_v25  ;;  %v953_v7 = vmul.f32 %v1774_v8, %v952_v36  ;;  %v3163_v38 = vld [vmem:[#allocation23_spill] sm:$0xff]  ;;  %v3166_v40 = vld [vmem:[#allocation25_spill] sm:$0xff] }
 0x2fe   :  { %v3167_v36 = vld [vmem:[#allocation27_spill] sm:$0xff] }
 0x2ff   :  { %v2769_v29 = vadd.f32 %v969_v24, %v968_v35  ;;  %v954_v4 = vadd.f32 %v1774_v8, %v953_v7  ;;  %v3168_v35 = vld [vmem:[#allocation26_spill] sm:$0xff]  ;;  %v3169_v7 = vld [vmem:[#allocation28_spill] sm:$0xff] }
 0x301   :  { %1777 = vtanh.f32 %v2769_v29  ;;  %v958_v0 = vsel %vm957_vm14, %v1774_v8, %v954_v4  ;;  %v3159_v8 = vld [vmem:[#allocation19_spill] sm:$0xff]  ;;  %v3170_v4 = vld [vmem:[#allocation29_spill] sm:$0xff] }
 0x302   :  { %v963_v5 = vsel %vm960_vm15, %v962_v32, %v958_v0  ;;  %v3173_v0 = vld [vmem:[#allocation32_spill] sm:$0xff]  ;;  %v3174_v32 = vld [vmem:[#allocation33_spill] sm:$0xff] }
 0x307   :  { %v1778_v2 = vpop.eup %1777 }
 0x308   :  { %v972_v28 = vmul.f32 %v1778_v2, %v963_v5  ;;  %v3175_v2 = vld [vmem:[#allocation35_spill] sm:$0xff]  ;;  %v3176_v5 = vld [vmem:[#allocation34_spill] sm:$0xff] }
 0x30a   :  { %974 = vst [vmem:[#allocation1] sm:$0xff] %v972_v28  ;;  %v983_v26 = vrot.slane %v972_v28, 6  ;;  %v3177_v28 = vld [vmem:[#allocation36_spill] sm:$0xff] }
 0x30c   :  { %1001 = vmatmul.f32.vlgmr.msrb.gmra.mxu0 %v983_v26  ;;  %1021 = vmatmul.f32.vlgmr.msrb.gmra.mxu1 %v983_v26 }
 0x30d   :  { %1041 = vmatmul.f32.vlgmr.msrb.gmra.mxu2 %v983_v26  ;;  %1061 = vmatmul.f32.vlgmr.msrb.gmra.mxu3 %v983_v26  ;;  %v3178_v26 = vld [vmem:[#allocation37_spill] sm:$0xff] }
 0x30e   :  { %1314 = vmatpush.msrb.mxu0 %v2500_v17  ;;  %1334 = vmatpush.msrb.mxu1 %v2503_v39 }
 0x30f   :  { %1354 = vmatpush.msrb.mxu2 %v2506_v42  ;;  %1374 = vmatpush.msrb.mxu3 %v2509_v57 }
 0x310   :  { %1315 = vmatpush.msrb.mxu0 %v2512_v47  ;;  %1335 = vmatpush.msrb.mxu1 %v2515_v48 }
 0x311   :  { %v976_v24 = vld [vmem:[#allocation1 + $0x6] ss:$9 sm:$0xff]  ;;  %1355 = vmatpush.msrb.mxu2 %v2518_v59  ;;  %1375 = vmatpush.msrb.mxu3 %v2521_v54 }
 0x312   :  { %v978_v25 = vld [vmem:[#allocation1 + $0x7] ss:$9 sm:$0xff]  ;;  %981 = vst [vmem:[#allocation10 + $0x3] sm:$0x1] %v976_v24  ;;  %1316 = vmatpush.msrb.mxu0 %v2524_v49  ;;  %1336 = vmatpush.msrb.mxu1 %v2527_v46 }
 0x313   :  { %982 = vst [vmem:[#allocation10 + $0xb] sm:$0x1] %v978_v25  ;;  %1356 = vmatpush.msrb.mxu2 %v2530_v51  ;;  %1376 = vmatpush.msrb.mxu3 %v2533_v45  ;;  %v3179_v24 = vld [vmem:[#allocation39_spill] sm:$0xff]  ;;  %v3180_v25 = vld [vmem:[#allocation38_spill] sm:$0xff] }
 0x314   :  { %1317 = vmatpush.msrb.mxu0 %v2536_v62  ;;  %1337 = vmatpush.msrb.mxu1 %v2539_v63 }
 0x315   :  { %1357 = vmatpush.msrb.mxu2 %v2542_v55  ;;  %1377 = vmatpush.msrb.mxu3 %v2545_v31 }
 0x316   :  { %1318 = vmatpush.msrb.mxu0 %v2548_v60  ;;  %1338 = vmatpush.msrb.mxu1 %v2551_v50 }
 0x317   :  { %1358 = vmatpush.msrb.mxu2 %v2626_v9  ;;  %1378 = vmatpush.msrb.mxu3 %v2629_v10 }
 0x318   :  { %1319 = vmatpush.msrb.mxu0 %v2632_v12  ;;  %1339 = vmatpush.msrb.mxu1 %v2635_v13 }
 0x319   :  { %1359 = vmatpush.msrb.mxu2 %v2638_v14  ;;  %1379 = vmatpush.msrb.mxu3 %v2641_v15 }
 0x31a   :  { %1320 = vmatpush.msrb.mxu0 %v2644_v16  ;;  %1340 = vmatpush.msrb.mxu1 %v2647_v44 }
 0x31b   :  { %1360 = vmatpush.msrb.mxu2 %v2650_v52  ;;  %1380 = vmatpush.msrb.mxu3 %v2653_v53 }
 0x31c   :  { %1321 = vmatpush.msrb.mxu0 %v2656_v61  ;;  %1341 = vmatpush.msrb.mxu1 %v2659_v41 }
 0x31d   :  { %1361 = vmatpush.msrb.mxu2 %v2662_v43  ;;  %1381 = vmatpush.msrb.mxu3 %v2665_v56 }
 0x31e   :  { %1322 = vmatpush.msrb.mxu0 %v2668_v18  ;;  %1342 = vmatpush.msrb.mxu1 %v2671_v19 }
 0x31f   :  { %1362 = vmatpush.msrb.mxu2 %v2674_v20  ;;  %1382 = vmatpush.msrb.mxu3 %v2677_v21 }
 0x320   :  { %1323 = vmatpush.msrb.mxu0 %v2680_v22  ;;  %1343 = vmatpush.msrb.mxu1 %v2683_v23 }
 0x321   :  { %1363 = vmatpush.msrb.mxu2 %v3156_v27  ;;  %1383 = vmatpush.msrb.mxu3 %v3157_v33 }
 0x322   :  { %1324 = vmatpush.msrb.mxu0 %v3158_v6  ;;  %1344 = vmatpush.msrb.mxu1 %v3159_v8 }
 0x323   :  { %1364 = vmatpush.msrb.mxu2 %v3160_v1  ;;  %1384 = vmatpush.msrb.mxu3 %v3161_v11 }
 0x324   :  { %1325 = vmatpush.msrb.mxu0 %v3162_v30  ;;  %1345 = vmatpush.msrb.mxu1 %v3163_v38 }
 0x325   :  { %1365 = vmatpush.msrb.mxu2 %v3164_v3  ;;  %1385 = vmatpush.msrb.mxu3 %v3165_v58 }
 0x326   :  { %1326 = vmatpush.msrb.mxu0 %v3166_v40  ;;  %1346 = vmatpush.msrb.mxu1 %v3167_v36 }
 0x327   :  { %1366 = vmatpush.msrb.mxu2 %v3168_v35  ;;  %1386 = vmatpush.msrb.mxu3 %v3169_v7  ;;  %v3182_v7 = vld [vmem:[#allocation40_spill] sm:$0xff]  ;;  %v3183_v35 = vld [vmem:[#allocation41_spill] sm:$0xff] }
 0x328   :  { %1327 = vmatpush.msrb.mxu0 %v3170_v4  ;;  %1347 = vmatpush.msrb.mxu1 %v3171_v37  ;;  %v3181_v4 = vld [vmem:[#allocation43_spill] sm:$0xff] }
 0x329   :  { %1367 = vmatpush.msrb.mxu2 %v3172_v34  ;;  %1387 = vmatpush.msrb.mxu3 %v3173_v0 }
 0x32a   :  { %1328 = vmatpush.msrb.mxu0 %v3174_v32  ;;  %1348 = vmatpush.msrb.mxu1 %v3175_v2 }
 0x32b   :  { %1368 = vmatpush.msrb.mxu2 %v3176_v5  ;;  %1388 = vmatpush.msrb.mxu3 %v3177_v28  ;;  %v3184_v28 = vld [vmem:[#allocation42_spill] sm:$0xff] }
 0x32c   :  { %1329 = vmatpush.msrb.mxu0 %v3178_v26  ;;  %1349 = vmatpush.msrb.mxu1 %v3179_v24 }
 0x32d   :  { %1369 = vmatpush.msrb.mxu2 %v3180_v25  ;;  %1389 = vmatpush.msrb.mxu3 %v3181_v4 }
 0x389   :  { %v1002_v37 = vpop.f32.mrf.mxu0  ;;  %v1022_v34 = vpop.f32.mrf.mxu1 }
 0x38a   :  { %v1065_v0 = vadd.f32 %v1002_v37, %v3182_v7  ;;  %v1066_v32 = vadd.f32 %v1022_v34, %v3183_v35  ;;  %v3185_v34 = vld [vmem:[#allocation45_spill] sm:$0xff] }
 0x38c   :  { %v1693_v36 = vmul.f32 -1.442695, %v1065_v0  ;;  %v1694_v2 = vmul.f32 -1.442695, %v1066_v32 }
 0x38e   :  { %1779 = vpow2.f32 %v1693_v36 }
 0x38f   :  { %1781 = vpow2.f32 %v1694_v2 }
 0x390   :  { %v1062_v5 = vpop.f32.mrf.mxu3  ;;  %v1042_v4 = vpop.f32.mrf.mxu2 }
 0x391   :  { %v1068_v40 = vadd.f32 %v1062_v5, %v3184_v28  ;;  %v1067_v0 = vadd.f32 %v1042_v4, %v3185_v34 }
 0x393   :  { %v1695_v26 = vmul.f32 -1.442695, %v1068_v40 }
 0x394   :  { %v1780_v58 = vpop.eup %1779 }
 0x395   :  { %v1782_v24 = vpop.eup %1781  ;;  %v1072_v3 = vadd.f32 1.0, %v1780_v58  ;;  %1783 = vpow2.f32 %v1695_v26 }
 0x396   :  { %v1091_v25 = vadd.f32 1.0, %v1782_v24 }
 0x397   :  { %1785 = vrcp.f32 %v1072_v3  ;;  %v1084_v40 = vand.u32 2147483648, %v1072_v3  ;;  %v1082_v26 = vand.u32 2147483647, %v1072_v3  ;;  %vm1078_vm2 = vweird.f32 %v1072_v3 }
 0x398   :  { %1787 = vrcp.f32 %v1091_v25  ;;  %v1103_v28 = vand.u32 2147483648, %v1091_v25  ;;  %v1101_v30 = vand.u32 2147483647, %v1091_v25  ;;  %vm1097_vm3 = vweird.f32 %v1091_v25 }
 0x399   :  { %v1085_v4 = vor.u32 1.1754944e-38, %v1084_v40  ;;  %vm1083_vm6 = vcmp.eq.f32.partialorder %v1082_v26, 8.507059e+37 }
 0x39a   :  { %vm1102_vm7 = vcmp.eq.f32.partialorder %v1101_v30, 8.507059e+37 }
 0x39b   :  { %v1784_v38 = vpop.eup %1783 }
 0x39c   :  { %v1111_v37 = vadd.f32 1.0, %v1784_v38 }
 0x39d   :  { %v1786_v7 = vpop.eup %1785 }
 0x39e   :  { %v1788_v32 = vpop.eup %1787  ;;  %v1074_v36 = vmul.f32 %v1786_v7, %v1072_v3  ;;  %1789 = vrcp.f32 %v1111_v37  ;;  %vm1079_vm0 = vweird.f32 %v1786_v7  ;;  %vm1117_vm9 = vweird.f32 %v1111_v37 }
 0x39f   :  { %v1093_v2 = vmul.f32 %v1788_v32, %v1091_v25  ;;  %1791 = vtanh.f32 %v1067_v0  ;;  %vm1098_vm1 = vweird.f32 %v1788_v32  ;;  %vm1080_vm4 = vmor %vm1078_vm2, %vm1079_vm0  ;;  %v1128_v0 = vrot.slane %v2769_v29, 6 }
 0x3a0   :  { %v1075_v35 = vsub.f32 1.0, %v1074_v36  ;;  %vm1099_vm5 = vmor %vm1097_vm3, %vm1098_vm1  ;;  %v1104_v36 = vor.u32 1.1754944e-38, %v1103_v28  ;;  %v1123_v28 = vand.u32 2147483648, %v1111_v37 }
 0x3a1   :  { %v1094_v5 = vsub.f32 1.0, %v1093_v2 }
 0x3a2   :  { %v1076_v58 = vmul.f32 %v1786_v7, %v1075_v35  ;;  %v1124_v26 = vor.u32 1.1754944e-38, %v1123_v28 }
 0x3a3   :  { %v1095_v24 = vmul.f32 %v1788_v32, %v1094_v5 }
 0x3a4   :  { %v1790_v11 = vpop.eup %1789  ;;  %v1077_v38 = vadd.f32 %v1786_v7, %v1076_v58 }
 0x3a5   :  { %v1096_v34 = vadd.f32 %v1788_v32, %v1095_v24  ;;  %v1113_v1 = vmul.f32 %v1790_v11, %v1111_v37  ;;  %v1792_v35 = vpop.eup %1791  ;;  %vm1118_vm8 = vweird.f32 %v1790_v11 }
 0x3a6   :  { %v1081_v2 = vsel %vm1080_vm4, %v1786_v7, %v1077_v38  ;;  %v1121_v7 = vand.u32 2147483647, %v1111_v37  ;;  %vm1119_vm10 = vmor %vm1117_vm9, %vm1118_vm8 }
 0x3a7   :  { %v1086_v8 = vsel %vm1083_vm6, %v1085_v4, %v1081_v2  ;;  %v1100_v6 = vsel %vm1099_vm5, %v1788_v32, %v1096_v34  ;;  %v1114_v5 = vsub.f32 1.0, %v1113_v1 }
 0x3a8   :  { %v1105_v33 = vsel %vm1102_vm7, %v1104_v36, %v1100_v6  ;;  %v1131_v27 = vmul.f32 %v1792_v35, %v1086_v8  ;;  %vm1122_vm11 = vcmp.eq.f32.partialorder %v1121_v7, 8.507059e+37  ;;  %v3215_v35 = vld [vmem:[#allocation45_spill] sm:$0xff] }
 0x3a9   :  { %v1130_v58 = vmul.f32 %v1128_v0, %v1105_v33  ;;  %v1115_v3 = vmul.f32 %v1790_v11, %v1114_v5 }
 0x3ab   :  { %v2841_v25 = vadd.f32 %v1131_v27, %v1130_v58  ;;  %v1116_v40 = vadd.f32 %v1790_v11, %v1115_v3  ;;  %v3214_v27 = vld [vmem:[#allocation42_spill] sm:$0xff] }
 0x3ad   :  { %1793 = vtanh.f32 %v2841_v25  ;;  %v1120_v29 = vsel %vm1119_vm10, %v1790_v11, %v1116_v40 }
 0x3ae   :  { %v1125_v30 = vsel %vm1122_vm11, %v1124_v26, %v1120_v29 }
 0x3b3   :  { %v1794_v34 = vpop.eup %1793 }
 0x3b4   :  { %v1134_v1 = vmul.f32 %v1794_v34, %v1125_v30 }
 0x3b6   :  { %v1136_v6 = vrot.slane %v1134_v1, 1  ;;  %1138 = vst [vmem:[#allocation10 + $0x4] sm:$0x1] %v1134_v1  ;;  %1156 = vmatmul.f32.vlgmr.msra.gmra.mxu0 %v1134_v1  ;;  %1176 = vmatmul.f32.vlgmr.msra.gmra.mxu1 %v1134_v1 }
 0x3b7   :  { %1196 = vmatmul.f32.vlgmr.msra.gmra.mxu2 %v1134_v1  ;;  %1216 = vmatmul.f32.vlgmr.msra.gmra.mxu3 %v1134_v1 }
 0x3b8   :  { %1139 = vst [vmem:[#allocation10 + $0xc] sm:$0x1] %v1136_v6  ;;  %1488 = vmatpush.msra.mxu0 %v2500_v17  ;;  %1508 = vmatpush.msra.mxu1 %v2503_v39  ;;  %v3186_v17 = vld [vmem:[#allocation15_spill] sm:$0xff]  ;;  %v3187_v39 = vld [vmem:[#allocation16_spill] sm:$0xff] }
 0x3b9   :  { %1528 = vmatpush.msra.mxu2 %v2506_v42  ;;  %1548 = vmatpush.msra.mxu3 %v2509_v57  ;;  %v3188_v42 = vld [vmem:[#allocation17_spill] sm:$0xff]  ;;  %v3189_v57 = vld [vmem:[#allocation19_spill] sm:$0xff] }
 0x3ba   :  { %1489 = vmatpush.msra.mxu0 %v2512_v47  ;;  %1509 = vmatpush.msra.mxu1 %v2515_v48  ;;  %v3190_v47 = vld [vmem:[#allocation18_spill] sm:$0xff]  ;;  %v3191_v48 = vld [vmem:[#allocation20_spill] sm:$0xff] }
 0x3bb   :  { %1529 = vmatpush.msra.mxu2 %v2518_v59  ;;  %1549 = vmatpush.msra.mxu3 %v2521_v54  ;;  %v3192_v59 = vld [vmem:[#allocation21_spill] sm:$0xff]  ;;  %v3193_v54 = vld [vmem:[#allocation23_spill] sm:$0xff] }
 0x3bc   :  { %1490 = vmatpush.msra.mxu0 %v2524_v49  ;;  %1510 = vmatpush.msra.mxu1 %v2527_v46  ;;  %v3194_v49 = vld [vmem:[#allocation22_spill] sm:$0xff]  ;;  %v3195_v46 = vld [vmem:[#allocation24_spill] sm:$0xff] }
 0x3bd   :  { %1530 = vmatpush.msra.mxu2 %v2530_v51  ;;  %1550 = vmatpush.msra.mxu3 %v2533_v45  ;;  %v3196_v51 = vld [vmem:[#allocation25_spill] sm:$0xff]  ;;  %v3197_v45 = vld [vmem:[#allocation27_spill] sm:$0xff] }
 0x3be   :  { %1491 = vmatpush.msra.mxu0 %v2536_v62  ;;  %1511 = vmatpush.msra.mxu1 %v2539_v63  ;;  %v3198_v62 = vld [vmem:[#allocation26_spill] sm:$0xff]  ;;  %v3199_v63 = vld [vmem:[#allocation28_spill] sm:$0xff] }
 0x3bf   :  { %1531 = vmatpush.msra.mxu2 %v2542_v55  ;;  %1551 = vmatpush.msra.mxu3 %v2545_v31  ;;  %v3200_v55 = vld [vmem:[#allocation29_spill] sm:$0xff]  ;;  %v3201_v31 = vld [vmem:[#allocation31_spill] sm:$0xff] }
 0x3c0   :  { %1492 = vmatpush.msra.mxu0 %v2548_v60  ;;  %1512 = vmatpush.msra.mxu1 %v2551_v50  ;;  %v3202_v60 = vld [vmem:[#allocation30_spill] sm:$0xff]  ;;  %v3203_v50 = vld [vmem:[#allocation32_spill] sm:$0xff] }
 0x3c1   :  { %1532 = vmatpush.msra.mxu2 %v2626_v9  ;;  %1552 = vmatpush.msra.mxu3 %v2629_v10  ;;  %v3204_v9 = vld [vmem:[#allocation33_spill] sm:$0xff]  ;;  %v3205_v10 = vld [vmem:[#allocation35_spill] sm:$0xff] }
 0x3c2   :  { %1493 = vmatpush.msra.mxu0 %v2632_v12  ;;  %1513 = vmatpush.msra.mxu1 %v2635_v13  ;;  %v3206_v12 = vld [vmem:[#allocation34_spill] sm:$0xff]  ;;  %v3207_v13 = vld [vmem:[#allocation36_spill] sm:$0xff] }
 0x3c3   :  { %1533 = vmatpush.msra.mxu2 %v2638_v14  ;;  %1553 = vmatpush.msra.mxu3 %v2641_v15  ;;  %v3208_v14 = vld [vmem:[#allocation37_spill] sm:$0xff]  ;;  %v3209_v15 = vld [vmem:[#allocation39_spill] sm:$0xff] }
 0x3c4   :  { %1494 = vmatpush.msra.mxu0 %v2644_v16  ;;  %1514 = vmatpush.msra.mxu1 %v2647_v44  ;;  %v3210_v16 = vld [vmem:[#allocation38_spill] sm:$0xff]  ;;  %v3211_v44 = vld [vmem:[#allocation43_spill] sm:$0xff] }
 0x3c5   :  { %1534 = vmatpush.msra.mxu2 %v2650_v52  ;;  %1554 = vmatpush.msra.mxu3 %v2653_v53 }
 0x3c6   :  { %1495 = vmatpush.msra.mxu0 %v2656_v61  ;;  %1515 = vmatpush.msra.mxu1 %v2659_v41 }
 0x3c7   :  { %1535 = vmatpush.msra.mxu2 %v2662_v43  ;;  %1555 = vmatpush.msra.mxu3 %v2665_v56  ;;  %v3212_v43 = vld [vmem:[#allocation40_spill] sm:$0xff] }
 0x3c8   :  { %1496 = vmatpush.msra.mxu0 %v2668_v18  ;;  %1516 = vmatpush.msra.mxu1 %v2671_v19  ;;  %v3213_v18 = vld [vmem:[#allocation41_spill] sm:$0xff] }
 0x3c9   :  { %1536 = vmatpush.msra.mxu2 %v2674_v20  ;;  %1556 = vmatpush.msra.mxu3 %v2677_v21 }
 0x3ca   :  { %1497 = vmatpush.msra.mxu0 %v2680_v22  ;;  %1517 = vmatpush.msra.mxu1 %v2683_v23 }
 0x3cb   :  { %1537 = vmatpush.msra.mxu2 %v3186_v17  ;;  %1557 = vmatpush.msra.mxu3 %v3187_v39 }
 0x3cc   :  { %1498 = vmatpush.msra.mxu0 %v3188_v42  ;;  %1518 = vmatpush.msra.mxu1 %v3189_v57 }
 0x3cd   :  { %1538 = vmatpush.msra.mxu2 %v3190_v47  ;;  %1558 = vmatpush.msra.mxu3 %v3191_v48  ;;  %v1295_v48 = vrot.slane %v2841_v25, 6 }
 0x3ce   :  { %1499 = vmatpush.msra.mxu0 %v3192_v59  ;;  %1519 = vmatpush.msra.mxu1 %v3193_v54 }
 0x3cf   :  { %1539 = vmatpush.msra.mxu2 %v3194_v49  ;;  %1559 = vmatpush.msra.mxu3 %v3195_v46 }
 0x3d0   :  { %1500 = vmatpush.msra.mxu0 %v3196_v51  ;;  %1520 = vmatpush.msra.mxu1 %v3197_v45 }
 0x3d1   :  { %1540 = vmatpush.msra.mxu2 %v3198_v62  ;;  %1560 = vmatpush.msra.mxu3 %v3199_v63 }
 0x3d2   :  { %1501 = vmatpush.msra.mxu0 %v3200_v55  ;;  %1521 = vmatpush.msra.mxu1 %v3201_v31 }
 0x3d3   :  { %1541 = vmatpush.msra.mxu2 %v3202_v60  ;;  %1561 = vmatpush.msra.mxu3 %v3203_v50 }
 0x3d4   :  { %1502 = vmatpush.msra.mxu0 %v3204_v9  ;;  %1522 = vmatpush.msra.mxu1 %v3205_v10 }
 0x3d5   :  { %1542 = vmatpush.msra.mxu2 %v3206_v12  ;;  %1562 = vmatpush.msra.mxu3 %v3207_v13 }
 0x3d6   :  { %1503 = vmatpush.msra.mxu0 %v3208_v14  ;;  %1523 = vmatpush.msra.mxu1 %v3209_v15 }
 0x3d7   :  { %1543 = vmatpush.msra.mxu2 %v3210_v16  ;;  %1563 = vmatpush.msra.mxu3 %v3211_v44 }
 0x433   :  { %v1157_v52 = vpop.f32.mrf.mxu0  ;;  %v1177_v53 = vpop.f32.mrf.mxu1 }
 0x434   :  { %v1224_v61 = vrot.slane %v1157_v52, 6  ;;  %v1225_v41 = vrot.slane %v1177_v53, 6 }
 0x436   :  { %v1232_v56 = vadd.f32 %v1224_v61, %v3212_v43  ;;  %v1233_v19 = vadd.f32 %v1225_v41, %v3213_v18 }
 0x438   :  { %v1696_v20 = vmul.f32 -1.442695, %v1232_v56  ;;  %v1697_v21 = vmul.f32 -1.442695, %v1233_v19 }
 0x43a   :  { %1795 = vpow2.f32 %v1696_v20  ;;  %v1217_v22 = vpop.f32.mrf.mxu3  ;;  %v1197_v38 = vpop.f32.mrf.mxu2 }
 0x43b   :  { %1797 = vpow2.f32 %v1697_v21  ;;  %v1227_v23 = vrot.slane %v1217_v22, 6  ;;  %v1226_v4 = vrot.slane %v1197_v38, 6 }
 0x43d   :  { %v1235_v33 = vadd.f32 %v1227_v23, %v3214_v27  ;;  %v1234_v5 = vadd.f32 %v1226_v4, %v3215_v35 }
 0x43f   :  { %v1698_v8 = vmul.f32 -1.442695, %v1235_v33 }
 0x440   :  { %v1796_v11 = vpop.eup %1795 }
 0x441   :  { %v1798_v37 = vpop.eup %1797  ;;  %v1239_v32 = vadd.f32 1.0, %v1796_v11  ;;  %1799 = vpow2.f32 %v1698_v8 }
 0x442   :  { %v1258_v24 = vadd.f32 1.0, %v1798_v37 }
 0x443   :  { %1801 = vrcp.f32 %v1239_v32  ;;  %v1251_v29 = vand.u32 2147483648, %v1239_v32  ;;  %v1249_v30 = vand.u32 2147483647, %v1239_v32  ;;  %vm1245_vm14 = vweird.f32 %v1239_v32 }
 0x444   :  { %1803 = vrcp.f32 %v1258_v24  ;;  %v1270_v26 = vand.u32 2147483648, %v1258_v24  ;;  %v1268_v6 = vand.u32 2147483647, %v1258_v24  ;;  %vm1264_vm15 = vweird.f32 %v1258_v24 }
 0x445   :  { %v1252_v42 = vor.u32 1.1754944e-38, %v1251_v29  ;;  %vm1250_vm2 = vcmp.eq.f32.partialorder %v1249_v30, 8.507059e+37 }
 0x446   :  { %v1271_v59 = vor.u32 1.1754944e-38, %v1270_v26  ;;  %vm1269_vm3 = vcmp.eq.f32.partialorder %v1268_v6, 8.507059e+37 }
 0x447   :  { %v1800_v36 = vpop.eup %1799 }
 0x448   :  { %v1278_v2 = vadd.f32 1.0, %v1800_v36 }
 0x449   :  { %v1802_v0 = vpop.eup %1801 }
 0x44a   :  { %v1804_v58 = vpop.eup %1803  ;;  %v1241_v3 = vmul.f32 %v1802_v0, %v1239_v32  ;;  %1805 = vrcp.f32 %v1278_v2  ;;  %vm1246_vm12 = vweird.f32 %v1802_v0  ;;  %v1290_v25 = vand.u32 2147483648, %v1278_v2 }
 0x44b   :  { %v1260_v40 = vmul.f32 %v1804_v58, %v1258_v24  ;;  %1807 = vtanh.f32 %v1234_v5  ;;  %vm1265_vm13 = vweird.f32 %v1804_v58  ;;  %vm1247_vm0 = vmor %vm1245_vm14, %vm1246_vm12  ;;  %vm1284_vm5 = vweird.f32 %v1278_v2 }
 0x44c   :  { %v1242_v28 = vsub.f32 1.0, %v1241_v3  ;;  %vm1266_vm1 = vmor %vm1264_vm15, %vm1265_vm13  ;;  %v1288_v9 = vand.u32 2147483647, %v1278_v2  ;;  %v1291_v12 = vor.u32 1.1754944e-38, %v1290_v25 }
 0x44d   :  { %v1261_v7 = vsub.f32 1.0, %v1260_v40 }
 0x44e   :  { %v1243_v34 = vmul.f32 %v1802_v0, %v1242_v28  ;;  %vm1289_vm7 = vcmp.eq.f32.partialorder %v1288_v9, 8.507059e+37 }
 0x44f   :  { %v1262_v1 = vmul.f32 %v1804_v58, %v1261_v7 }
 0x450   :  { %v1806_v17 = vpop.eup %1805  ;;  %v1244_v39 = vadd.f32 %v1802_v0, %v1243_v34 }
 0x451   :  { %v1263_v57 = vadd.f32 %v1804_v58, %v1262_v1  ;;  %v1280_v47 = vmul.f32 %v1806_v17, %v1278_v2  ;;  %v1808_v49 = vpop.eup %1807  ;;  %vm1285_vm4 = vweird.f32 %v1806_v17 }
 0x452   :  { %v1248_v54 = vsel %vm1247_vm0, %v1802_v0, %v1244_v39  ;;  %vm1286_vm6 = vmor %vm1284_vm5, %vm1285_vm4 }
 0x453   :  { %v1253_v46 = vsel %vm1250_vm2, %v1252_v42, %v1248_v54  ;;  %v1267_v51 = vsel %vm1266_vm1, %v1804_v58, %v1263_v57  ;;  %v1281_v45 = vsub.f32 1.0, %v1280_v47 }
 0x454   :  { %v1272_v62 = vsel %vm1269_vm3, %v1271_v59, %v1267_v51  ;;  %v1298_v63 = vmul.f32 %v1808_v49, %v1253_v46 }
 0x455   :  { %v1297_v55 = vmul.f32 %v1295_v48, %v1272_v62  ;;  %v1282_v31 = vmul.f32 %v1806_v17, %v1281_v45 }
 0x457   :  { %v2913_v60 = vadd.f32 %v1298_v63, %v1297_v55  ;;  %v1283_v50 = vadd.f32 %v1806_v17, %v1282_v31 }
 0x459   :  { %1809 = vtanh.f32 %v2913_v60  ;;  %v1287_v10 = vsel %vm1286_vm6, %v1806_v17, %v1283_v50  ;;  %v1469_v59 = vrot.slane %v2913_v60, 6 }
 0x45a   :  { %v1292_v14 = vsel %vm1289_vm7, %v1291_v12, %v1287_v10 }
 0x45f   :  { %v1810_v13 = vpop.eup %1809 }
 0x460   :  { %v1301_v15 = vmul.f32 %v1810_v13, %v1292_v14 }
 0x462   :  { %1303 = vst [vmem:[#allocation1] sm:$0xff] %v1301_v15  ;;  %v1312_v16 = vrot.slane %v1301_v15, 2 }
 0x464   :  { %1330 = vmatmul.f32.vlgmr.msrb.gmra.mxu0 %v1312_v16  ;;  %1350 = vmatmul.f32.vlgmr.msrb.gmra.mxu1 %v1312_v16 }
 0x465   :  { %1370 = vmatmul.f32.vlgmr.msrb.gmra.mxu2 %v1312_v16  ;;  %1390 = vmatmul.f32.vlgmr.msrb.gmra.mxu3 %v1312_v16 }
 0x469   :  { %v1305_v44 = vld [vmem:[#allocation1 + $0x2] ss:$9 sm:$0xff] }
 0x46a   :  { %v1307_v52 = vld [vmem:[#allocation1 + $0x3] ss:$9 sm:$0xff]  ;;  %1310 = vst [vmem:[#allocation10 + $0x5] sm:$0x1] %v1305_v44 }
 0x46b   :  { %1311 = vst [vmem:[#allocation10 + $0xd] sm:$0x1] %v1307_v52 }
 0x4e1   :  { %v1331_v53 = vpop.f32.mrf.mxu0  ;;  %v1351_v61 = vpop.f32.mrf.mxu1 }
 0x4e2   :  { %v1398_v41 = vrot.slane %v1331_v53, 4  ;;  %v1399_v56 = vrot.slane %v1351_v61, 4 }
 0x4e4   :  { %v1406_v19 = vadd.f32 %v1398_v41, %v3212_v43  ;;  %v1407_v20 = vadd.f32 %v1399_v56, %v3213_v18 }
 0x4e6   :  { %v1699_v21 = vmul.f32 -1.442695, %v1406_v19  ;;  %v1700_v22 = vmul.f32 -1.442695, %v1407_v20 }
 0x4e8   :  { %1811 = vpow2.f32 %v1699_v21  ;;  %v1391_v23 = vpop.f32.mrf.mxu3  ;;  %v1371_v4 = vpop.f32.mrf.mxu2 }
 0x4e9   :  { %1813 = vpow2.f32 %v1700_v22  ;;  %v1401_v33 = vrot.slane %v1391_v23, 4  ;;  %v1400_v36 = vrot.slane %v1371_v4, 4 }
 0x4eb   :  { %v1409_v8 = vadd.f32 %v1401_v33, %v3214_v27  ;;  %v1408_v58 = vadd.f32 %v1400_v36, %v3215_v35 }
 0x4ed   :  { %v1701_v11 = vmul.f32 -1.442695, %v1409_v8 }
 0x4ee   :  { %v1812_v37 = vpop.eup %1811 }
 0x4ef   :  { %v1814_v32 = vpop.eup %1813  ;;  %v1413_v24 = vadd.f32 1.0, %v1812_v37  ;;  %1815 = vpow2.f32 %v1701_v11 }
 0x4f0   :  { %v1432_v38 = vadd.f32 1.0, %v1814_v32 }
 0x4f1   :  { %1817 = vrcp.f32 %v1413_v24  ;;  %v1425_v26 = vand.u32 2147483648, %v1413_v24  ;;  %v1423_v1 = vand.u32 2147483647, %v1413_v24  ;;  %vm1419_vm10 = vweird.f32 %v1413_v24 }
 0x4f2   :  { %1819 = vrcp.f32 %v1432_v38  ;;  %v1444_v34 = vand.u32 2147483648, %v1432_v38  ;;  %v1442_v17 = vand.u32 2147483647, %v1432_v38  ;;  %vm1438_vm11 = vweird.f32 %v1432_v38 }
 0x4f3   :  { %v1426_v57 = vor.u32 1.1754944e-38, %v1425_v26  ;;  %vm1424_vm14 = vcmp.eq.f32.partialorder %v1423_v1, 8.507059e+37 }
 0x4f4   :  { %v1445_v54 = vor.u32 1.1754944e-38, %v1444_v34  ;;  %vm1443_vm15 = vcmp.eq.f32.partialorder %v1442_v17, 8.507059e+37 }
 0x4f5   :  { %v1816_v2 = vpop.eup %1815 }
 0x4f6   :  { %v1452_v0 = vadd.f32 1.0, %v1816_v2 }
 0x4f7   :  { %v1818_v5 = vpop.eup %1817 }
 0x4f8   :  { %v1820_v3 = vpop.eup %1819  ;;  %v1415_v40 = vmul.f32 %v1818_v5, %v1413_v24  ;;  %1821 = vrcp.f32 %v1452_v0  ;;  %vm1420_vm8 = vweird.f32 %v1818_v5  ;;  %v1464_v60 = vand.u32 2147483648, %v1452_v0 }
 0x4f9   :  { %v1434_v28 = vmul.f32 %v1820_v3, %v1432_v38  ;;  %1823 = vtanh.f32 %v1408_v58  ;;  %vm1439_vm9 = vweird.f32 %v1820_v3  ;;  %vm1421_vm12 = vmor %vm1419_vm10, %vm1420_vm8  ;;  %vm1458_vm1 = vweird.f32 %v1452_v0 }
 0x4fa   :  { %v1416_v7 = vsub.f32 1.0, %v1415_v40  ;;  %vm1440_vm13 = vmor %vm1438_vm11, %vm1439_vm9  ;;  %v1462_v10 = vand.u32 2147483647, %v1452_v0  ;;  %v1465_v13 = vor.u32 1.1754944e-38, %v1464_v60 }
 0x4fb   :  { %v1435_v29 = vsub.f32 1.0, %v1434_v28 }
 0x4fc   :  { %v1417_v30 = vmul.f32 %v1818_v5, %v1416_v7  ;;  %vm1463_vm3 = vcmp.eq.f32.partialorder %v1462_v10, 8.507059e+37 }
 0x4fd   :  { %v1436_v6 = vmul.f32 %v1820_v3, %v1435_v29 }
 0x4fe   :  { %v1822_v39 = vpop.eup %1821  ;;  %v1418_v42 = vadd.f32 %v1818_v5, %v1417_v30 }
 0x4ff   :  { %v1437_v47 = vadd.f32 %v1820_v3, %v1436_v6  ;;  %v1454_v48 = vmul.f32 %v1822_v39, %v1452_v0  ;;  %v1824_v46 = vpop.eup %1823  ;;  %vm1459_vm0 = vweird.f32 %v1822_v39 }
 0x500   :  { %v1422_v49 = vsel %vm1421_vm12, %v1818_v5, %v1418_v42  ;;  %vm1460_vm2 = vmor %vm1458_vm1, %vm1459_vm0 }
 0x501   :  { %v1427_v51 = vsel %vm1424_vm14, %v1426_v57, %v1422_v49  ;;  %v1441_v45 = vsel %vm1440_vm13, %v1820_v3, %v1437_v47  ;;  %v1455_v62 = vsub.f32 1.0, %v1454_v48 }
 0x502   :  { %v1446_v63 = vsel %vm1443_vm15, %v1445_v54, %v1441_v45  ;;  %v1472_v55 = vmul.f32 %v1824_v46, %v1427_v51 }
 0x503   :  { %v1471_v31 = vmul.f32 %v1469_v59, %v1446_v63  ;;  %v1456_v50 = vmul.f32 %v1822_v39, %v1455_v62 }
 0x505   :  { %v2921_v25 = vadd.f32 %v1472_v55, %v1471_v31  ;;  %v1457_v9 = vadd.f32 %v1822_v39, %v1456_v50 }
 0x507   :  { %1825 = vtanh.f32 %v2921_v25  ;;  %v1461_v12 = vsel %vm1460_vm2, %v1822_v39, %v1457_v9  ;;  %v1643_v57 = vrot.slane %v2921_v25, 6 }
 0x508   :  { %v1466_v15 = vsel %vm1463_vm3, %v1465_v13, %v1461_v12 }
 0x50d   :  { %v1826_v14 = vpop.eup %1825 }
 0x50e   :  { %v1475_v16 = vmul.f32 %v1826_v14, %v1466_v15 }
 0x510   :  { %1477 = vst [vmem:[#allocation1] sm:$0xff] %v1475_v16  ;;  %v1486_v44 = vrot.slane %v1475_v16, 4 }
 0x512   :  { %1504 = vmatmul.f32.vlgmr.msra.gmra.mxu0 %v1486_v44  ;;  %1524 = vmatmul.f32.vlgmr.msra.gmra.mxu1 %v1486_v44 }
 0x513   :  { %1544 = vmatmul.f32.vlgmr.msra.gmra.mxu2 %v1486_v44  ;;  %1564 = vmatmul.f32.vlgmr.msra.gmra.mxu3 %v1486_v44 }
 0x517   :  { %v1479_v52 = vld [vmem:[#allocation1 + $0x4] ss:$9 sm:$0xff] }
 0x518   :  { %v1481_v53 = vld [vmem:[#allocation1 + $0x5] ss:$9 sm:$0xff]  ;;  %1484 = vst [vmem:[#allocation10 + $0x6] sm:$0x1] %v1479_v52 }
 0x519   :  { %1485 = vst [vmem:[#allocation10 + $0xe] sm:$0x1] %v1481_v53 }
 0x58f   :  { %v1505_v61 = vpop.f32.mrf.mxu0  ;;  %v1525_v41 = vpop.f32.mrf.mxu1 }
 0x590   :  { %v1572_v56 = vrot.slane %v1505_v61, 2  ;;  %v1573_v19 = vrot.slane %v1525_v41, 2 }
 0x592   :  { %v1580_v20 = vadd.f32 %v1572_v56, %v3212_v43  ;;  %v1581_v21 = vadd.f32 %v1573_v19, %v3213_v18 }
 0x594   :  { %v1702_v22 = vmul.f32 -1.442695, %v1580_v20  ;;  %v1703_v23 = vmul.f32 -1.442695, %v1581_v21 }
 0x596   :  { %1827 = vpow2.f32 %v1702_v22  ;;  %v1565_v33 = vpop.f32.mrf.mxu3  ;;  %v1545_v36 = vpop.f32.mrf.mxu2 }
 0x597   :  { %1829 = vpow2.f32 %v1703_v23  ;;  %v1575_v8 = vrot.slane %v1565_v33, 2  ;;  %v1574_v43 = vrot.slane %v1545_v36, 2 }
 0x599   :  { %v1583_v11 = vadd.f32 %v1575_v8, %v3214_v27  ;;  %v1582_v5 = vadd.f32 %v1574_v43, %v3215_v35 }
 0x59b   :  { %v1704_v37 = vmul.f32 -1.442695, %v1583_v11 }
 0x59c   :  { %v1828_v32 = vpop.eup %1827 }
 0x59d   :  { %v1830_v24 = vpop.eup %1829  ;;  %v1587_v38 = vadd.f32 1.0, %v1828_v32  ;;  %1831 = vpow2.f32 %v1704_v37 }
 0x59e   :  { %v1606_v4 = vadd.f32 1.0, %v1830_v24 }
 0x59f   :  { %1833 = vrcp.f32 %v1587_v38  ;;  %v1599_v7 = vand.u32 2147483648, %v1587_v38  ;;  %v1597_v34 = vand.u32 2147483647, %v1587_v38  ;;  %vm1593_vm6 = vweird.f32 %v1587_v38 }
 0x5a0   :  { %1835 = vrcp.f32 %v1606_v4  ;;  %v1618_v29 = vand.u32 2147483648, %v1606_v4  ;;  %v1616_v1 = vand.u32 2147483647, %v1606_v4  ;;  %vm1612_vm7 = vweird.f32 %v1606_v4 }
 0x5a1   :  { %v1600_v35 = vor.u32 1.1754944e-38, %v1599_v7  ;;  %vm1598_vm10 = vcmp.eq.f32.partialorder %v1597_v34, 8.507059e+37 }
 0x5a2   :  { %v1619_v47 = vor.u32 1.1754944e-38, %v1618_v29  ;;  %vm1617_vm11 = vcmp.eq.f32.partialorder %v1616_v1, 8.507059e+37 }
 0x5a3   :  { %v1832_v2 = vpop.eup %1831 }
 0x5a4   :  { %v1626_v18 = vadd.f32 1.0, %v1832_v2 }
 0x5a5   :  { %v1834_v0 = vpop.eup %1833 }
 0x5a6   :  { %v1836_v58 = vpop.eup %1835  ;;  %v1589_v3 = vmul.f32 %v1834_v0, %v1587_v38  ;;  %1837 = vrcp.f32 %v1626_v18  ;;  %vm1594_vm4 = vweird.f32 %v1834_v0  ;;  %v1638_v50 = vand.u32 2147483648, %v1626_v18 }
 0x5a7   :  { %v1608_v40 = vmul.f32 %v1836_v58, %v1606_v4  ;;  %1839 = vtanh.f32 %v1582_v5  ;;  %vm1613_vm5 = vweird.f32 %v1836_v58  ;;  %vm1595_vm8 = vmor %vm1593_vm6, %vm1594_vm4  ;;  %vm1632_vm13 = vweird.f32 %v1626_v18 }
 0x5a8   :  { %v1590_v27 = vsub.f32 1.0, %v1589_v3  ;;  %vm1614_vm9 = vmor %vm1612_vm7, %vm1613_vm5  ;;  %v1636_v25 = vand.u32 2147483647, %v1626_v18  ;;  %v1639_v60 = vor.u32 1.1754944e-38, %v1638_v50 }
 0x5a9   :  { %v1609_v28 = vsub.f32 1.0, %v1608_v40 }
 0x5aa   :  { %v1591_v26 = vmul.f32 %v1834_v0, %v1590_v27  ;;  %vm1637_vm15 = vcmp.eq.f32.partialorder %v1636_v25, 8.507059e+37 }
 0x5ab   :  { %v1610_v30 = vmul.f32 %v1836_v58, %v1609_v28 }
 0x5ac   :  { %v1838_v6 = vpop.eup %1837  ;;  %v1592_v17 = vadd.f32 %v1834_v0, %v1591_v26 }
 0x5ad   :  { %v1611_v39 = vadd.f32 %v1836_v58, %v1610_v30  ;;  %v1628_v42 = vmul.f32 %v1838_v6, %v1626_v18  ;;  %v1840_v59 = vpop.eup %1839  ;;  %vm1633_vm12 = vweird.f32 %v1838_v6 }
 0x5ae   :  { %v1596_v48 = vsel %vm1595_vm8, %v1834_v0, %v1592_v17  ;;  %vm1634_vm14 = vmor %vm1632_vm13, %vm1633_vm12 }
 0x5af   :  { %v1601_v54 = vsel %vm1598_vm10, %v1600_v35, %v1596_v48  ;;  %v1615_v49 = vsel %vm1614_vm9, %v1836_v58, %v1611_v39  ;;  %v1629_v46 = vsub.f32 1.0, %v1628_v42 }
 0x5b0   :  { %v1620_v51 = vsel %vm1617_vm11, %v1619_v47, %v1615_v49  ;;  %v1646_v45 = vmul.f32 %v1840_v59, %v1601_v54 }
 0x5b1   :  { %v1645_v62 = vmul.f32 %v1643_v57, %v1620_v51  ;;  %v1630_v63 = vmul.f32 %v1838_v6, %v1629_v46 }
 0x5b3   :  { %v1647_v55 = vadd.f32 %v1646_v45, %v1645_v62  ;;  %v1631_v31 = vadd.f32 %v1838_v6, %v1630_v63 }
 0x5b5   :  { %1841 = vtanh.f32 %v1647_v55  ;;  %v1635_v9 = vsel %vm1634_vm14, %v1838_v6, %v1631_v31 }
 0x5b6   :  { %v1640_v12 = vsel %vm1637_vm15, %v1639_v60, %v1635_v9 }
 0x5bb   :  { %v1842_v10 = vpop.eup %1841 }
 0x5bc   :  { %v1649_v13 = vmul.f32 %v1842_v10, %v1640_v12 }
 0x5be   :  { %1651 = vst [vmem:[#allocation1] sm:$0xff] %v1649_v13 }
 0x5c5   :  { %v1653_v14 = vld [vmem:[#allocation1 + $0x6] ss:$9 sm:$0xff] }
 0x5c6   :  { %v1655_v15 = vld [vmem:[#allocation1 + $0x7] ss:$9 sm:$0xff]  ;;  %1658 = vst [vmem:[#allocation10 + $0x7] sm:$0x1] %v1653_v14 }
 0x5c7   :  { %1659 = vst [vmem:[#allocation10 + $0xf] sm:$0x1] %v1655_v15 }
 0x5c8   :  { %1672 = dma.vmem_to_hbm [thread:$0]  %s1665_s3, 256, %s1667_s13, [#allocation4], %s2039_s27, %s2039_s27, %s2040_s28  }
 0x5c9   :  { %2033 = dma.done.wait [#allocation4], 256  }
 0x5ca   :  { %2034 = vsyncadd [#allocation4], 4294967040 }
 0x5cb   :  { %1677 = vsyncpa [#allocation3], 1 }
 0x5cc   :  { %1678 = vsyncpa [#allocation6], 1 }
 0x5cd   :  { %1679 = vsyncpa [#allocation9], 1 }
 0x5ce   :  { %1680 = vsyncpa [#allocation4], 1 }

</bundles_post_ra>
